<compile_context>
chip_gen: v6e
topology: v6e:2x2x1
jax: 0.10.0
libtpu: 0.0.40
codegen_flags: <defaults>
</compile_context>

<pallas_src>
import jax
import jax.numpy as jnp
from jax.experimental import pallas as pl
from jax.experimental.pallas import tpu as pltpu

LANE = 128
EMB = 300            # emb_size (module default)
H1, H2, H3 = 300, 128, 12
EPS = 1e-5


def _pad_lane(n):
    return ((n + LANE - 1) // LANE) * LANE


EMB_P = _pad_lane(EMB)   # 384
H1_P = _pad_lane(H1)     # 384
H2_P = _pad_lane(H2)     # 128
H3_P = _pad_lane(H3)     # 128


# ----------------------------------------------------------------------------
# Kernel
# ----------------------------------------------------------------------------
def encoder_kernel(x_ref,
                   w1_ref, b1_ref, g1_ref, be1_ref,
                   w2_ref, b2_ref, g2_ref, be2_ref,
                   w3_ref, b3_ref, g3_ref, be3_ref,
                   o_ref):
    inv_b = jnp.float32(1.0 / x_ref.shape[0])

    def block(h_bf16, w_ref, b_ref, g_ref, be_ref):
        # Linear: bf16 MXU inputs, f32 accumulation.
        y = jnp.dot(h_bf16, w_ref[...], preferred_element_type=jnp.float32)
        y = jnp.maximum(y + b_ref[...], 0.0)                       # bias + ReLU
        # BatchNorm1d, training-mode (biased) batch statistics, single pass.
        s1 = jnp.sum(y, axis=0, keepdims=True)
        s2 = jnp.sum(y * y, axis=0, keepdims=True)
        mean = s1 * inv_b
        var = s2 * inv_b - mean * mean                             # biased var
        scale = g_ref[...] * jax.lax.rsqrt(var + EPS)              # EUP rsqrt
        shift = be_ref[...] - mean * scale
        return y * scale + shift                                   # one FMA sweep

    h1 = block(x_ref[...], w1_ref, b1_ref, g1_ref, be1_ref)
    h2 = block(h1.astype(jnp.bfloat16), w2_ref, b2_ref, g2_ref, be2_ref)
    h3 = block(h2.astype(jnp.bfloat16), w3_ref, b3_ref, g3_ref, be3_ref)
    o_ref[...] = h3.astype(o_ref.dtype)


# ----------------------------------------------------------------------------
# Wrapper
# ----------------------------------------------------------------------------
def encoder_forward(x, kparams):
    """x: [B, EMB] float32; kparams: padded/bf16 params from prepare_kernel_params."""
    B, F = x.shape
    assert F == EMB, F

    # VMEM budget check for the full-batch-resident BN strategy.
    weight_bytes = 2 * (EMB_P * H1_P + H1_P * H2_P + H2_P * H3_P)   # bf16 weights
    act_bytes = B * 8 * 1024      # generous per-row budget (activations + temporaries)
    assert weight_bytes + act_bytes < (40 << 20), (
        "batch too large for the full-batch-resident BatchNorm kernel")
    # TODO(synk): for batches exceeding the VMEM budget, switch to a batch-tiled
    # two-pass-per-layer pipeline (sum/sumsq accumulation pass + normalize pass)
    # so BatchNorm still sees full-batch statistics.

    # Lane-dense, bf16 input (padding columns are zero => exact no-op).
    x_p = jnp.pad(x, ((0, 0), (0, EMB_P - EMB))).astype(jnp.bfloat16)

    vmem = pl.BlockSpec(memory_space=pltpu.MemorySpace.VMEM)
    flops = 2 * B * (EMB_P * H1_P + H1_P * H2_P + H2_P * H3_P)
    bytes_accessed = (B * EMB_P * 2 + B * H3_P * 4 + weight_bytes
                      + 4 * 3 * (H1_P + H2_P + H3_P))

    out_p = pl.pallas_call(
        encoder_kernel,
        out_shape=jax.ShapeDtypeStruct((B, H3_P), jnp.float32),
        in_specs=[vmem] * (1 + len(kparams)),
        out_specs=vmem,
        compiler_params=pltpu.CompilerParams(vmem_limit_bytes=48 << 20),
        cost_estimate=pl.CostEstimate(
            flops=flops,
            transcendentals=H1_P + H2_P + H3_P,
            bytes_accessed=bytes_accessed),
    )(x_p, *kparams)

    return out_p[:, :H3]    # slice padded 128 -> 12 real output features


# ----------------------------------------------------------------------------
# Parameters
# ----------------------------------------------------------------------------
def init_params(key):
    """PyTorch-Linear-style init (uniform +-1/sqrt(fan_in)), unpadded f32.
    Weights are stored pre-transposed as [in, out] so the kernel does x @ W + b."""
    ks = jax.random.split(key, 6)

    def linear(kw, kb, fan_in, fan_out):
        lim = 1.0 / jnp.sqrt(jnp.float32(fan_in))
        w = jax.random.uniform(kw, (fan_in, fan_out), jnp.float32, -lim, lim)
        b = jax.random.uniform(kb, (fan_out,), jnp.float32, -lim, lim)
        return w, b

    w1, b1 = linear(ks[0], ks[1], EMB, H1)
    w2, b2 = linear(ks[2], ks[3], H1, H2)
    w3, b3 = linear(ks[4], ks[5], H2, H3)

    def bn(n):
        return jnp.ones((n,), jnp.float32), jnp.zeros((n,), jnp.float32)

    g1, be1 = bn(H1)
    g2, be2 = bn(H2)
    g3, be3 = bn(H3)
    return (w1, b1, g1, be1, w2, b2, g2, be2, w3, b3, g3, be3)


def prepare_kernel_params(raw):
    """Pad to lane multiples (zeros) and cast weights to bf16; biases/gamma/beta
    stay f32 as [1, N_pad] rows.  Padded columns normalize to exactly 0 and hit
    zero weight rows in the next layer, so padding is numerically a no-op."""
    (w1, b1, g1, be1, w2, b2, g2, be2, w3, b3, g3, be3) = raw

    def padw(w, rp, cp):
        return jnp.pad(w, ((0, rp - w.shape[0]), (0, cp - w.shape[1]))).astype(jnp.bfloat16)

    def padv(v, cp):
        return jnp.pad(v, (0, cp - v.shape[0])).reshape(1, cp).astype(jnp.float32)

    return (padw(w1, EMB_P, H1_P), padv(b1, H1_P), padv(g1, H1_P), padv(be1, H1_P),
            padw(w2, H1_P, H2_P), padv(b2, H2_P), padv(g2, H2_P), padv(be2, H2_P),
            padw(w3, H2_P, H3_P), padv(b3, H3_P), padv(g3, H3_P), padv(be3, H3_P))


# ----------------------------------------------------------------------------
# Pure-JAX reference
# ----------------------------------------------------------------------------
def encoder_reference(x, raw, matmul_dtype=jnp.float32):
    """Reference forward pass.  matmul_dtype=jnp.bfloat16 mirrors the kernel's
    precision recipe (bf16 MXU inputs, f32 accumulation, f32 BN); the default
    f32 mode is the exact PyTorch training-mode forward.
    Note: running_mean / running_var buffer updates are NOT modeled (the module
    output in training mode does not depend on them)."""
    (w1, b1, g1, be1, w2, b2, g2, be2, w3, b3, g3, be3) = raw

    def block(h, w, b, g, be):
        y = jnp.dot(h.astype(matmul_dtype), w.astype(matmul_dtype),
                    preferred_element_type=jnp.float32)
        y = jnp.maximum(y + b, 0.0)
        mean = jnp.mean(y, axis=0, keepdims=True)
        var = jnp.mean(y * y, axis=0, keepdims=True) - mean * mean
        scale = g * jax.lax.rsqrt(var + EPS)
        shift = be - mean * scale
        return y * scale + shift

    h = block(x, w1, b1, g1, be1)
    h = block(h, w2, b2, g2, be2)
    h = block(h, w3, b3, g3, be3)
    return h


# ----------------------------------------------------------------------------
# Demo / self-test
# ----------------------------------------------------------------------------
if __name__ == "__main__":
    key = jax.random.PRNGKey(0)
    k_x, k_p = jax.random.split(key)

    # B = 128: a full MXU row tile and well-conditioned batch statistics.
    B = 128
    x = jax.random.normal(k_x, (B, EMB), dtype=jnp.float32)
    raw = init_params(k_p)
    kparams = prepare_kernel_params(raw)

    fwd = jax.jit(encoder_forward)
    out = jax.block_until_ready(fwd(x, kparams))

    assert out.shape == (B, H3), out.shape
    assert bool(jnp.all(jnp.isfinite(out)))

    # Matched-precision reference (same bf16-matmul / f32-BN recipe as kernel).
    # Tolerance allows for bf16 rounding of intermediate activations being
    # amplified by BatchNorm's per-feature 1/sqrt(var + eps).
    ref = encoder_reference(x, raw, matmul_dtype=jnp.bfloat16)
    max_diff = float(jnp.max(jnp.abs(out - ref)))
    assert jnp.allclose(out, ref, atol=3e-2, rtol=3e-2), max_diff

    print("KERNEL_OK")
</pallas_src>

<mosaic_0001>
module attributes {stable_mosaic.version = 11 : i64} {
  func.func @encoder_kernel(%arg0: memref<128x384xbf16, #tpu.memory_space<vmem>>, %arg1: memref<384x384xbf16, #tpu.memory_space<vmem>>, %arg2: memref<1x384xf32, #tpu.memory_space<vmem>>, %arg3: memref<1x384xf32, #tpu.memory_space<vmem>>, %arg4: memref<1x384xf32, #tpu.memory_space<vmem>>, %arg5: memref<384x128xbf16, #tpu.memory_space<vmem>>, %arg6: memref<1x128xf32, #tpu.memory_space<vmem>>, %arg7: memref<1x128xf32, #tpu.memory_space<vmem>>, %arg8: memref<1x128xf32, #tpu.memory_space<vmem>>, %arg9: memref<128x128xbf16, #tpu.memory_space<vmem>>, %arg10: memref<1x128xf32, #tpu.memory_space<vmem>>, %arg11: memref<1x128xf32, #tpu.memory_space<vmem>>, %arg12: memref<1x128xf32, #tpu.memory_space<vmem>>, %arg13: memref<128x128xf32, #tpu.memory_space<vmem>>) attributes {dimension_semantics = [], scalar_prefetch = 0 : i64, scratch_operands = 0 : i64, tpu.core_type = #tpu.core_type<tc>} {
    %c0 = arith.constant 0 : index
    %c0_0 = arith.constant 0 : index
    %0 = vector.load %arg0[%c0, %c0_0] : memref<128x384xbf16, #tpu.memory_space<vmem>>, vector<128x384xbf16>
    %c0_1 = arith.constant 0 : index
    %c0_2 = arith.constant 0 : index
    %1 = vector.load %arg1[%c0_1, %c0_2] : memref<384x384xbf16, #tpu.memory_space<vmem>>, vector<384x384xbf16>
    %cst = arith.constant dense<0.000000e+00> : vector<128x384xf32>
    %2 = tpu.matmul %0, %1, %cst {dimension_numbers = #tpu.dot_dimension_numbers<[1], [0], [0], [1], [0, 0, 1, 1], [], []>} : vector<128x384xbf16>, vector<384x384xbf16>, vector<128x384xf32> -> vector<128x384xf32>
    %c0_3 = arith.constant 0 : index
    %c0_4 = arith.constant 0 : index
    %3 = vector.load %arg2[%c0_3, %c0_4] : memref<1x384xf32, #tpu.memory_space<vmem>>, vector<1x384xf32>
    %4 = vector.broadcast %3 : vector<1x384xf32> to vector<128x384xf32>
    %5 = arith.addf %2, %4 : vector<128x384xf32>
    %cst_5 = arith.constant 0.000000e+00 : f32
    %6 = vector.broadcast %cst_5 : f32 to vector<128x384xf32>
    %7 = arith.maximumf %5, %6 : vector<128x384xf32>
    %cst_6 = arith.constant dense<0.000000e+00> : vector<384xf32>
    %8 = vector.multi_reduction <add>, %7, %cst_6 [0] : vector<128x384xf32> to vector<384xf32>
    %9 = vector.shape_cast %8 : vector<384xf32> to vector<1x384xf32>
    %10 = arith.mulf %7, %7 : vector<128x384xf32>
    %cst_7 = arith.constant dense<0.000000e+00> : vector<384xf32>
    %11 = vector.multi_reduction <add>, %10, %cst_7 [0] : vector<128x384xf32> to vector<384xf32>
    %12 = vector.shape_cast %11 : vector<384xf32> to vector<1x384xf32>
    %cst_8 = arith.constant 7.812500e-03 : f32
    %13 = vector.broadcast %cst_8 : f32 to vector<1x384xf32>
    %14 = arith.mulf %9, %13 : vector<1x384xf32>
    %cst_9 = arith.constant 7.812500e-03 : f32
    %15 = vector.broadcast %cst_9 : f32 to vector<1x384xf32>
    %16 = arith.mulf %12, %15 : vector<1x384xf32>
    %17 = arith.mulf %14, %14 : vector<1x384xf32>
    %18 = arith.subf %16, %17 : vector<1x384xf32>
    %c0_10 = arith.constant 0 : index
    %c0_11 = arith.constant 0 : index
    %19 = vector.load %arg3[%c0_10, %c0_11] : memref<1x384xf32, #tpu.memory_space<vmem>>, vector<1x384xf32>
    %cst_12 = arith.constant 9.99999974E-6 : f32
    %20 = vector.broadcast %cst_12 : f32 to vector<1x384xf32>
    %21 = arith.addf %18, %20 : vector<1x384xf32>
    %22 = math.rsqrt %21 : vector<1x384xf32>
    %23 = arith.mulf %19, %22 : vector<1x384xf32>
    %c0_13 = arith.constant 0 : index
    %c0_14 = arith.constant 0 : index
    %24 = vector.load %arg4[%c0_13, %c0_14] : memref<1x384xf32, #tpu.memory_space<vmem>>, vector<1x384xf32>
    %25 = arith.mulf %14, %23 : vector<1x384xf32>
    %26 = arith.subf %24, %25 : vector<1x384xf32>
    %27 = vector.broadcast %23 : vector<1x384xf32> to vector<128x384xf32>
    %28 = arith.mulf %7, %27 : vector<128x384xf32>
    %29 = vector.broadcast %26 : vector<1x384xf32> to vector<128x384xf32>
    %30 = arith.addf %28, %29 : vector<128x384xf32>
    %31 = arith.truncf %30 : vector<128x384xf32> to vector<128x384xbf16>
    %c0_15 = arith.constant 0 : index
    %c0_16 = arith.constant 0 : index
    %32 = vector.load %arg5[%c0_15, %c0_16] : memref<384x128xbf16, #tpu.memory_space<vmem>>, vector<384x128xbf16>
    %cst_17 = arith.constant dense<0.000000e+00> : vector<128x128xf32>
    %33 = tpu.matmul %31, %32, %cst_17 {dimension_numbers = #tpu.dot_dimension_numbers<[1], [0], [0], [1], [0, 0, 1, 1], [], []>} : vector<128x384xbf16>, vector<384x128xbf16>, vector<128x128xf32> -> vector<128x128xf32>
    %c0_18 = arith.constant 0 : index
    %c0_19 = arith.constant 0 : index
    %34 = vector.load %arg6[%c0_18, %c0_19] : memref<1x128xf32, #tpu.memory_space<vmem>>, vector<1x128xf32>
    %35 = vector.broadcast %34 : vector<1x128xf32> to vector<128x128xf32>
    %36 = arith.addf %33, %35 : vector<128x128xf32>
    %cst_20 = arith.constant 0.000000e+00 : f32
    %37 = vector.broadcast %cst_20 : f32 to vector<128x128xf32>
    %38 = arith.maximumf %36, %37 : vector<128x128xf32>
    %cst_21 = arith.constant dense<0.000000e+00> : vector<128xf32>
    %39 = vector.multi_reduction <add>, %38, %cst_21 [0] : vector<128x128xf32> to vector<128xf32>
    %40 = vector.shape_cast %39 : vector<128xf32> to vector<1x128xf32>
    %41 = arith.mulf %38, %38 : vector<128x128xf32>
    %cst_22 = arith.constant dense<0.000000e+00> : vector<128xf32>
    %42 = vector.multi_reduction <add>, %41, %cst_22 [0] : vector<128x128xf32> to vector<128xf32>
    %43 = vector.shape_cast %42 : vector<128xf32> to vector<1x128xf32>
    %cst_23 = arith.constant 7.812500e-03 : f32
    %44 = vector.broadcast %cst_23 : f32 to vector<1x128xf32>
    %45 = arith.mulf %40, %44 : vector<1x128xf32>
    %cst_24 = arith.constant 7.812500e-03 : f32
    %46 = vector.broadcast %cst_24 : f32 to vector<1x128xf32>
    %47 = arith.mulf %43, %46 : vector<1x128xf32>
    %48 = arith.mulf %45, %45 : vector<1x128xf32>
    %49 = arith.subf %47, %48 : vector<1x128xf32>
    %c0_25 = arith.constant 0 : index
    %c0_26 = arith.constant 0 : index
    %50 = vector.load %arg7[%c0_25, %c0_26] : memref<1x128xf32, #tpu.memory_space<vmem>>, vector<1x128xf32>
    %cst_27 = arith.constant 9.99999974E-6 : f32
    %51 = vector.broadcast %cst_27 : f32 to vector<1x128xf32>
    %52 = arith.addf %49, %51 : vector<1x128xf32>
    %53 = math.rsqrt %52 : vector<1x128xf32>
    %54 = arith.mulf %50, %53 : vector<1x128xf32>
    %c0_28 = arith.constant 0 : index
    %c0_29 = arith.constant 0 : index
    %55 = vector.load %arg8[%c0_28, %c0_29] : memref<1x128xf32, #tpu.memory_space<vmem>>, vector<1x128xf32>
    %56 = arith.mulf %45, %54 : vector<1x128xf32>
    %57 = arith.subf %55, %56 : vector<1x128xf32>
    %58 = vector.broadcast %54 : vector<1x128xf32> to vector<128x128xf32>
    %59 = arith.mulf %38, %58 : vector<128x128xf32>
    %60 = vector.broadcast %57 : vector<1x128xf32> to vector<128x128xf32>
    %61 = arith.addf %59, %60 : vector<128x128xf32>
    %62 = arith.truncf %61 : vector<128x128xf32> to vector<128x128xbf16>
    %c0_30 = arith.constant 0 : index
    %c0_31 = arith.constant 0 : index
    %63 = vector.load %arg9[%c0_30, %c0_31] : memref<128x128xbf16, #tpu.memory_space<vmem>>, vector<128x128xbf16>
    %cst_32 = arith.constant dense<0.000000e+00> : vector<128x128xf32>
    %64 = tpu.matmul %62, %63, %cst_32 {dimension_numbers = #tpu.dot_dimension_numbers<[1], [0], [0], [1], [0, 0, 1, 1], [], []>} : vector<128x128xbf16>, vector<128x128xbf16>, vector<128x128xf32> -> vector<128x128xf32>
    %c0_33 = arith.constant 0 : index
    %c0_34 = arith.constant 0 : index
    %65 = vector.load %arg10[%c0_33, %c0_34] : memref<1x128xf32, #tpu.memory_space<vmem>>, vector<1x128xf32>
    %66 = vector.broadcast %65 : vector<1x128xf32> to vector<128x128xf32>
    %67 = arith.addf %64, %66 : vector<128x128xf32>
    %cst_35 = arith.constant 0.000000e+00 : f32
    %68 = vector.broadcast %cst_35 : f32 to vector<128x128xf32>
    %69 = arith.maximumf %67, %68 : vector<128x128xf32>
    %cst_36 = arith.constant dense<0.000000e+00> : vector<128xf32>
    %70 = vector.multi_reduction <add>, %69, %cst_36 [0] : vector<128x128xf32> to vector<128xf32>
    %71 = vector.shape_cast %70 : vector<128xf32> to vector<1x128xf32>
    %72 = arith.mulf %69, %69 : vector<128x128xf32>
    %cst_37 = arith.constant dense<0.000000e+00> : vector<128xf32>
    %73 = vector.multi_reduction <add>, %72, %cst_37 [0] : vector<128x128xf32> to vector<128xf32>
    %74 = vector.shape_cast %73 : vector<128xf32> to vector<1x128xf32>
    %cst_38 = arith.constant 7.812500e-03 : f32
    %75 = vector.broadcast %cst_38 : f32 to vector<1x128xf32>
    %76 = arith.mulf %71, %75 : vector<1x128xf32>
    %cst_39 = arith.constant 7.812500e-03 : f32
    %77 = vector.broadcast %cst_39 : f32 to vector<1x128xf32>
    %78 = arith.mulf %74, %77 : vector<1x128xf32>
    %79 = arith.mulf %76, %76 : vector<1x128xf32>
    %80 = arith.subf %78, %79 : vector<1x128xf32>
    %c0_40 = arith.constant 0 : index
    %c0_41 = arith.constant 0 : index
    %81 = vector.load %arg11[%c0_40, %c0_41] : memref<1x128xf32, #tpu.memory_space<vmem>>, vector<1x128xf32>
    %cst_42 = arith.constant 9.99999974E-6 : f32
    %82 = vector.broadcast %cst_42 : f32 to vector<1x128xf32>
    %83 = arith.addf %80, %82 : vector<1x128xf32>
    %84 = math.rsqrt %83 : vector<1x128xf32>
    %85 = arith.mulf %81, %84 : vector<1x128xf32>
    %c0_43 = arith.constant 0 : index
    %c0_44 = arith.constant 0 : index
    %86 = vector.load %arg12[%c0_43, %c0_44] : memref<1x128xf32, #tpu.memory_space<vmem>>, vector<1x128xf32>
    %87 = arith.mulf %76, %85 : vector<1x128xf32>
    %88 = arith.subf %86, %87 : vector<1x128xf32>
    %89 = vector.broadcast %85 : vector<1x128xf32> to vector<128x128xf32>
    %90 = arith.mulf %69, %89 : vector<128x128xf32>
    %91 = vector.broadcast %88 : vector<1x128xf32> to vector<128x128xf32>
    %92 = arith.addf %90, %91 : vector<128x128xf32>
    %c0_45 = arith.constant 0 : index
    %c0_46 = arith.constant 0 : index
    %93 = vector.load %arg13[%c0_45, %c0_46] : memref<128x128xf32, #tpu.memory_space<vmem>>, vector<128x128xf32>
    tpu.vector_store %arg13[%c0_45, %c0_46], %92 {strides = array<i32>} : memref<128x128xf32, #tpu.memory_space<vmem>>, vector<128x128xf32>,
    return
  }
}

</mosaic_0001>

<bundles_post_ra>
// kernel: encoder_forward.1
= control target key start
LH: loop header
LB: loop body
LE: loop exit
PB: predicated region body
PF: predicated region fallthrough
CT: control target
= control target key end

     0   :  { %v2996_v1 = vmov 0   ;;  %s4395_s1 = inlined_call_operand.vmem [shape: bf16[384,384], index: 1, kind: input, shape index: {}]   ;;  %s4396_s0 = inlined_call_operand.vmem [shape: bf16[128,384], index: 0, kind: input, shape index: {}]   ;;  %s4397_s2 = inlined_call_operand.vmem [shape: f32[1,384], index: 2, kind: input, shape index: {}]   ;;  %s4398_s5 = inlined_call_operand.vmem [shape: bf16[384,128], index: 5, kind: input, shape index: {}]   ;;  %s4399_s3 = inlined_call_operand.vmem [shape: f32[1,384], index: 3, kind: input, shape index: {}]   ;;  %s4400_s4 = inlined_call_operand.vmem [shape: f32[1,384], index: 4, kind: input, shape index: {}]   ;;  %s4401_s9 = inlined_call_operand.vmem [shape: bf16[128,128], index: 9, kind: input, shape index: {}]   ;;  %s4402_s6 = inlined_call_operand.vmem [shape: f32[1,128], index: 6, kind: input, shape index: {}]   ;;  %s4403_s7 = inlined_call_operand.vmem [shape: f32[1,128], index: 7, kind: input, shape index: {}]   ;;  %s4404_s8 = inlined_call_operand.vmem [shape: f32[1,128], index: 8, kind: input, shape index: {}]   ;;  %s4405_s10 = inlined_call_operand.vmem [shape: f32[1,128], index: 10, kind: input, shape index: {}]   ;;  %s4406_s11 = inlined_call_operand.vmem [shape: f32[1,128], index: 11, kind: input, shape index: {}]   ;;  %s4407_s12 = inlined_call_operand.vmem [shape: f32[1,128], index: 12, kind: input, shape index: {}]   ;;  %s4408_s13 = inlined_call_operand.vmem [shape: f32[128,128], index: 13, kind: output, shape index: {}]  }
   0x1   :  { %v2826_v0 = vld [vmem:[%s4395_s1 + $0xac] ss:$12 sps:$4 sm:$0xff]   ;;  %847 = vmatprep.mubr.bf16.mxu1 %v2996_v1  ;;  %v2830_v3 = vld [vmem:[%s4395_s1 + $0xa8] ss:$12 sps:$4 sm:$0xff]   ;;  %v2836_v7 = vld [vmem:[%s4395_s1 + $0x90] ss:$12 sps:$4 sm:$0xff]  }
   0x2   :  { %v2828_v2 = vld [vmem:[%s4395_s1 + $0x22c] ss:$12 sps:$4 sm:$0xff]   ;;  %702 = vmatprep.subr.bf16.mxu0 %v2826_v0  ;;  %v2831_v4 = vld [vmem:[%s4395_s1 + $0x228] ss:$12 sps:$4 sm:$0xff]   ;;  %v2837_v8 = vld [vmem:[%s4395_s1 + $0x210] ss:$12 sps:$4 sm:$0xff]  }
   0x3   :  { %815 = vmatprep.subr.bf16.mxu1 %v2828_v2  ;;  %v2832_v5 = vld [vmem:[%s4395_s1 + $0x94] ss:$12 sps:$4 sm:$0xff]   ;;  %703 = vmatpush1.bf16.msra.mxu0 %v2830_v3  ;;  %v2838_v9 = vld [vmem:[%s4395_s1 + $0x7c] ss:$12 sps:$4 sm:$0xff]   ;;  %v2842_v11 = vld [vmem:[%s4395_s1 + $0x78] ss:$12 sps:$4 sm:$0xff]  }
   0x4   :  { %816 = vmatpush1.bf16.msra.mxu1 %v2831_v4  ;;  %v2834_v6 = vld [vmem:[%s4395_s1 + $0x214] ss:$12 sps:$4 sm:$0xff]   ;;  %704 = vmatprep.subr.bf16.mxu0 %v2832_v5  ;;  %v2840_v10 = vld [vmem:[%s4395_s1 + $0x1fc] ss:$12 sps:$4 sm:$0xff]   ;;  %v2843_v12 = vld [vmem:[%s4395_s1 + $0x1f8] ss:$12 sps:$4 sm:$0xff]  }
   0x5   :  { %817 = vmatprep.subr.bf16.mxu1 %v2834_v6  ;;  %v2844_v13 = vld [vmem:[%s4395_s1 + $0x64] ss:$12 sps:$4 sm:$0xff]   ;;  %v2848_v15 = vld [vmem:[%s4395_s1 + $0x60] ss:$12 sps:$4 sm:$0xff]   ;;  %v2854_v19 = vld [vmem:[%s4395_s1 + $0x48] ss:$12 sps:$4 sm:$0xff]  }
   0x6   :  { %v2846_v14 = vld [vmem:[%s4395_s1 + $0x1e4] ss:$12 sps:$4 sm:$0xff]   ;;  %v2849_v16 = vld [vmem:[%s4395_s1 + $0x1e0] ss:$12 sps:$4 sm:$0xff]   ;;  %v2855_v20 = vld [vmem:[%s4395_s1 + $0x1c8] ss:$12 sps:$4 sm:$0xff]  }
   0x7   :  { %705 = vmatpush1.bf16.msra.mxu0 %v2836_v7  ;;  %v2850_v17 = vld [vmem:[%s4395_s1 + $0x4c] ss:$12 sps:$4 sm:$0xff]   ;;  %v2856_v21 = vld [vmem:[%s4395_s1 + $0x34] ss:$12 sps:$4 sm:$0xff]   ;;  %v2860_v23 = vld [vmem:[%s4395_s1 + $0x30] ss:$12 sps:$4 sm:$0xff]  }
   0x8   :  { %818 = vmatpush1.bf16.msra.mxu1 %v2837_v8  ;;  %706 = vmatprep.subr.bf16.mxu0 %v2838_v9  ;;  %v2852_v18 = vld [vmem:[%s4395_s1 + $0x1cc] ss:$12 sps:$4 sm:$0xff]   ;;  %v2858_v22 = vld [vmem:[%s4395_s1 + $0x1b4] ss:$12 sps:$4 sm:$0xff]   ;;  %v2861_v24 = vld [vmem:[%s4395_s1 + $0x1b0] ss:$12 sps:$4 sm:$0xff]  }
   0x9   :  { %819 = vmatprep.subr.bf16.mxu1 %v2840_v10  ;;  %v2862_v25 = vld [vmem:[%s4395_s1 + $0x1c] ss:$12 sps:$4 sm:$0xff]   ;;  %v2866_v27 = vld [vmem:[%s4395_s1 + $0x18] ss:$12 sps:$4 sm:$0xff]   ;;  %v2872_v31 = vld [vmem:[%s4395_s1] ss:$12 sps:$4 sm:$0xff]  }
   0xa   :  { %v2864_v26 = vld [vmem:[%s4395_s1 + $0x19c] ss:$12 sps:$4 sm:$0xff]   ;;  %v2867_v28 = vld [vmem:[%s4395_s1 + $0x198] ss:$12 sps:$4 sm:$0xff]   ;;  %v2873_v32 = vld [vmem:[%s4395_s1 + $0x180] ss:$12 sps:$4 sm:$0xff]  }
   0xb   :  { %707 = vmatpush1.bf16.msra.mxu0 %v2842_v11  ;;  %v2868_v29 = vld [vmem:[%s4395_s1 + $0x4] ss:$12 sps:$4 sm:$0xff]   ;;  %v2874_v33 = vld [vmem:[%s4395_s1 + $0x16c] ss:$12 sps:$4 sm:$0xff]   ;;  %v3174_v35 = vld [vmem:[%s4396_s0 + $0x8] ss:$12 sps:$4 sm:$0xff]  }
   0xc   :  { %820 = vmatpush1.bf16.msra.mxu1 %v2843_v12  ;;  %708 = vmatprep.subr.bf16.mxu0 %v2844_v13  ;;  %v2870_v30 = vld [vmem:[%s4395_s1 + $0x184] ss:$12 sps:$4 sm:$0xff]   ;;  %v2878_v36 = vld [vmem:[%s4395_s1 + $0x168] ss:$12 sps:$4 sm:$0xff]   ;;  %v2895_v43 = vld [vmem:[%s4395_s1 + $0x140] ss:$12 sps:$4 sm:$0xff]  }
   0xd   :  { %821 = vmatprep.subr.bf16.mxu1 %v2846_v14  ;;  %v2877_v34 = vld [vmem:[%s4395_s1 + $0x170] ss:$12 sps:$4 sm:$0xff]   ;;  %v2880_v38 = vld [vmem:[%s4395_s1 + $0x154] ss:$12 sps:$4 sm:$0xff]   ;;  %v2886_v39 = vld [vmem:[%s4395_s1 + $0x158] ss:$12 sps:$4 sm:$0xff]  }
   0xe   :  { %v2879_v37 = vld [vmem:[%s4395_s1 + $0xb0] ss:$12 sps:$4 sm:$0xff]   ;;  %v2888_v42 = vld [vmem:[%s4395_s1 + $0x98] ss:$12 sps:$4 sm:$0xff]   ;;  %v3205_v44 = vld [vmem:[%s4396_s0 + $0x20] ss:$12 sps:$4 sm:$0xff]  }
   0xf   :  { %709 = vmatpush1.bf16.msra.mxu0 %v2848_v15  ;;  %v2882_v40 = vld [vmem:[%s4395_s1 + $0x150] ss:$12 sps:$4 sm:$0xff]   ;;  %v2887_v45 = vld [vmem:[%s4395_s1 + $0x138] ss:$12 sps:$4 sm:$0xff]   ;;  %v2897_v47 = vld [vmem:[%s4395_s1 + $0x80] ss:$12 sps:$4 sm:$0xff]  }
  0x10   :  { %822 = vmatpush1.bf16.msra.mxu1 %v2849_v16  ;;  %710 = vmatprep.subr.bf16.mxu0 %v2850_v17  ;;  %v2883_v41 = vld [vmem:[%s4395_s1 + $0x13c] ss:$12 sps:$4 sm:$0xff]   ;;  %v2889_v46 = vld [vmem:[%s4395_s1 + $0x124] ss:$12 sps:$4 sm:$0xff]   ;;  %v2891_v49 = vld [vmem:[%s4395_s1 + $0x120] ss:$12 sps:$4 sm:$0xff]  }
  0x11   :  { %823 = vmatprep.subr.bf16.mxu1 %v2852_v18  ;;  %v2904_v48 = vld [vmem:[%s4395_s1 + $0x128] ss:$12 sps:$4 sm:$0xff]   ;;  %v2892_v50 = vld [vmem:[%s4395_s1 + $0x10c] ss:$12 sps:$4 sm:$0xff]   ;;  %v3238_v53 = vld [vmem:[%s4396_s0 + $0x4] ss:$12 sps:$4 sm:$0xff]  }
  0x12   :  { %v2906_v51 = vld [vmem:[%s4395_s1 + $0x68] ss:$12 sps:$4 sm:$0xff]   ;;  %v3233_v52 = vld [vmem:[%s4396_s0 + $0x38] ss:$12 sps:$4 sm:$0xff]   ;;  %734 = vmatprep.mubr.bf16.mxu0 %v3238_v53  ;;  %v2914_v55 = vld [vmem:[%s4395_s1 + $0x110] ss:$12 sps:$4 sm:$0xff]  }
  0x13   :  { %711 = vmatpush1.bf16.msra.mxu0 %v2854_v19  ;;  %v2896_v54 = vld [vmem:[%s4395_s1 + $0x108] ss:$12 sps:$4 sm:$0xff]   ;;  %v2916_v57 = vld [vmem:[%s4395_s1 + $0x50] ss:$12 sps:$4 sm:$0xff]   ;;  %v2921_v59 = vld [vmem:[%s4395_s1 + $0xf8] ss:$12 sps:$4 sm:$0xff]  }
  0x14   :  { %824 = vmatpush1.bf16.msra.mxu1 %v2855_v20  ;;  %712 = vmatprep.subr.bf16.mxu0 %v2856_v21  ;;  %v2898_v56 = vld [vmem:[%s4395_s1 + $0xf4] ss:$12 sps:$4 sm:$0xff]   ;;  %v2900_v58 = vld [vmem:[%s4395_s1 + $0xf0] ss:$12 sps:$4 sm:$0xff]   ;;  %v2923_v61 = vld [vmem:[%s4395_s1 + $0x38] ss:$12 sps:$4 sm:$0xff]  }
  0x15   :  { %825 = vmatprep.subr.bf16.mxu1 %v2858_v22  ;;  %v2901_v60 = vld [vmem:[%s4395_s1 + $0xdc] ss:$12 sps:$4 sm:$0xff]   ;;  %v2905_v63 = vld [vmem:[%s4395_s1 + $0xd8] ss:$12 sps:$4 sm:$0xff]   ;;  %v2928_v2 = vld [vmem:[%s4395_s1 + $0xe0] ss:$12 sps:$4 sm:$0xff]  }
  0x16   :  { %v3270_v62 = vld [vmem:[%s4396_s0 + $0x50] ss:$12 sps:$4 sm:$0xff]   ;;  %v2930_v3 = vld [vmem:[%s4395_s1 + $0x20] ss:$12 sps:$4 sm:$0xff]   ;;  %v3298_v7 = vld [vmem:[%s4396_s0 + $0x68] ss:$12 sps:$4 sm:$0xff]  }
  0x17   :  { %713 = vmatpush1.bf16.msra.mxu0 %v2860_v23  ;;  %v2907_v0 = vld [vmem:[%s4395_s1 + $0xc4] ss:$12 sps:$4 sm:$0xff]   ;;  %v2909_v4 = vld [vmem:[%s4395_s1 + $0xc0] ss:$12 sps:$4 sm:$0xff]   ;;  %v2935_v8 = vld [vmem:[%s4395_s1 + $0xc8] ss:$12 sps:$4 sm:$0xff]  }
  0x18   :  { %826 = vmatpush1.bf16.msra.mxu1 %v2861_v24  ;;  %714 = vmatprep.subr.bf16.mxu0 %v2862_v25  ;;  %v2910_v5 = vld [vmem:[%s4396_s0] ss:$12 sps:$4 sm:$0xff]   ;;  %v2915_v6 = vld [vmem:[%s4395_s1 + $0x230] ss:$12 sps:$4 sm:$0xff]   ;;  %v2922_v10 = vld [vmem:[%s4395_s1 + $0x218] ss:$12 sps:$4 sm:$0xff]  }
  0x19   :  { %827 = vmatprep.subr.bf16.mxu1 %v2864_v26  ;;  %v2917_v9 = vld [vmem:[%s4396_s0 + $0x1c] ss:$12 sps:$4 sm:$0xff]   ;;  %v2929_v12 = vld [vmem:[%s4395_s1 + $0x200] ss:$12 sps:$4 sm:$0xff]   ;;  %v2919_v13 = vld [vmem:[%s4396_s0 + $0x18] ss:$12 sps:$4 sm:$0xff]  }
  0x1a   :  { %v2937_v11 = vld [vmem:[%s4395_s1 + $0x8] ss:$12 sps:$4 sm:$0xff]   ;;  %v3323_v14 = vld [vmem:[%s4396_s0 + $0x80] ss:$12 sps:$4 sm:$0xff]   ;;  %v2941_v17 = vld [vmem:[%s4395_s1 + $0x1d0] ss:$12 sps:$4 sm:$0xff]  }
  0x1b   :  { %715 = vmatpush1.bf16.msra.mxu0 %v2866_v27  ;;  %v2924_v15 = vld [vmem:[%s4396_s0 + $0x34] ss:$12 sps:$4 sm:$0xff]   ;;  %v2926_v18 = vld [vmem:[%s4396_s0 + $0x30] ss:$12 sps:$4 sm:$0xff]   ;;  %v2927_v19 = vld [vmem:[%s4396_s0 + $0x98] ss:$12 sps:$4 sm:$0xff]  }
  0x1c   :  { %828 = vmatpush1.bf16.msra.mxu1 %v2867_v28  ;;  %716 = vmatprep.subr.bf16.mxu0 %v2868_v29  ;;  %v2936_v16 = vld [vmem:[%s4395_s1 + $0x1e8] ss:$12 sps:$4 sm:$0xff]   ;;  %v2931_v20 = vld [vmem:[%s4396_s0 + $0x4c] ss:$12 sps:$4 sm:$0xff]   ;;  %v2934_v24 = vld [vmem:[%s4396_s0 + $0xb0] ss:$12 sps:$4 sm:$0xff]  }
  0x1d   :  { %829 = vmatprep.subr.bf16.mxu1 %v2870_v30  ;;  %v2945_v21 = vld [vmem:[%s4395_s1 + $0x1b8] ss:$12 sps:$4 sm:$0xff]   ;;  %v2949_v22 = vld [vmem:[%s4395_s1 + $0x1a0] ss:$12 sps:$4 sm:$0xff]   ;;  %v2933_v23 = vld [vmem:[%s4396_s0 + $0x48] ss:$12 sps:$4 sm:$0xff]  }
  0x1e   :  { %v2938_v25 = vld [vmem:[%s4396_s0 + $0x64] ss:$12 sps:$4 sm:$0xff]   ;;  %v2940_v26 = vld [vmem:[%s4396_s0 + $0x60] ss:$12 sps:$4 sm:$0xff]   ;;  %v2942_v27 = vld [vmem:[%s4396_s0 + $0x7c] ss:$12 sps:$4 sm:$0xff]  }
  0x1f   :  { %717 = vmatpush1.bf16.msra.mxu0 %v2872_v31  ;;  %v2944_v28 = vld [vmem:[%s4396_s0 + $0x78] ss:$12 sps:$4 sm:$0xff]   ;;  %v2946_v29 = vld [vmem:[%s4396_s0 + $0x94] ss:$12 sps:$4 sm:$0xff]   ;;  %v2948_v30 = vld [vmem:[%s4396_s0 + $0x90] ss:$12 sps:$4 sm:$0xff]  }
  0x20   :  { %830 = vmatpush1.bf16.msra.mxu1 %v2873_v32  ;;  %718 = vmatprep.subr.bf16.mxu0 %v2874_v33  ;;  %v2950_v31 = vld [vmem:[%s4396_s0 + $0xac] ss:$12 sps:$4 sm:$0xff]   ;;  %v2952_v32 = vld [vmem:[%s4396_s0 + $0xa8] ss:$12 sps:$4 sm:$0xff]  }
  0x21   :  { %2552 = vmatprep.subr.bf16.mxu1 %v2877_v34 }
  0x23   :  { %848 = vmatmul.mubr.bf16.vlgmr.msra.gmra.mxu1 %v3174_v35  ;;  %719 = vmatpush2.bf16.msra.mxu0 %v2878_v36 }
  0x24   :  { %2553 = vmatpush3.bf16.msra.mxu1 %v2879_v37  ;;  %720 = vmatprep.subr.bf16.mxu0 %v2880_v38 }
  0x25   :  { %857 = vmatprep.mubr.bf16.mxu1 %v2996_v1  ;;  %2554 = vmatprep.subr.bf16.mxu1 %v2886_v39 }
  0x27   :  { %721 = vmatpush2.bf16.msra.mxu0 %v2882_v40 }
  0x28   :  { %2555 = vmatpush3.bf16.msra.mxu1 %v2888_v42  ;;  %722 = vmatprep.subr.bf16.mxu0 %v2883_v41  ;;  %v175_v42 = vlaneseq }
  0x29   :  { %2556 = vmatprep.subr.bf16.mxu1 %v2895_v43 }
  0x2b   :  { %858 = vmatmul.mubr.bf16.gmra.mxu1 %v3205_v44  ;;  %723 = vmatpush2.bf16.msra.mxu0 %v2887_v45  ;;  %v3408_v45 = vshrl.u32 %v175_v42, 7 }
  0x2c   :  { %867 = vmatprep.mubr.bf16.mxu1 %v2996_v1  ;;  %724 = vmatprep.subr.bf16.mxu0 %v2889_v46 }
  0x2d   :  { %2557 = vmatpush3.bf16.msra.mxu1 %v2897_v47 }
  0x2e   :  { %2558 = vmatprep.subr.bf16.mxu1 %v2904_v48  ;;  %v3415_v48 = vsub.s32 0, %v3408_v45 }
  0x2f   :  { %725 = vmatpush2.bf16.msra.mxu0 %v2891_v49 }
  0x30   :  { %726 = vmatprep.subr.bf16.mxu0 %v2892_v50  ;;  %v3422_v50 = vld [vmem:[%s4397_s2] sm:$0x7] }
  0x31   :  { %2559 = vmatpush3.bf16.msra.mxu1 %v2906_v51  ;;  %v3425_v51 = vsub.s32 1, %v3408_v45 }
  0x32   :  { %2560 = vmatprep.subr.bf16.mxu1 %v2914_v55 }
  0x33   :  { %868 = vmatmul.mubr.bf16.gmra.mxu1 %v3233_v52  ;;  %727 = vmatpush2.bf16.msra.mxu0 %v2896_v54  ;;  %v3437_v55 = vrot.slane %v3422_v50, %v3425_v51 }
  0x34   :  { %877 = vmatprep.mubr.bf16.mxu1 %v2996_v1  ;;  %728 = vmatprep.subr.bf16.mxu0 %v2898_v56 }
  0x35   :  { %2561 = vmatpush3.bf16.msra.mxu1 %v2916_v57 }
  0x36   :  { %2562 = vmatprep.subr.bf16.mxu1 %v2921_v59 }
  0x37   :  { %729 = vmatpush2.bf16.msra.mxu0 %v2900_v58 }
  0x38   :  { %730 = vmatprep.subr.bf16.mxu0 %v2901_v60 }
  0x39   :  { %2563 = vmatpush3.bf16.msra.mxu1 %v2923_v61 }
  0x3a   :  { %2564 = vmatprep.subr.bf16.mxu1 %v2928_v2 }
  0x3b   :  { %878 = vmatmul.mubr.bf16.gmra.mxu1 %v3270_v62  ;;  %731 = vmatpush2.bf16.msra.mxu0 %v2905_v63 }
  0x3c   :  { %887 = vmatprep.mubr.bf16.mxu1 %v2996_v1  ;;  %732 = vmatprep.subr.bf16.mxu0 %v2907_v0 }
  0x3d   :  { %2565 = vmatpush3.bf16.msra.mxu1 %v2930_v3 }
  0x3e   :  { %2566 = vmatprep.subr.bf16.mxu1 %v2935_v8 }
  0x3f   :  { %733 = vmatpush2.bf16.msra.mxu0 %v2909_v4 }
  0x40   :  { %2728 = vmatprep.subr.bf16.mxu0 %v2915_v6 }
  0x41   :  { %2567 = vmatpush3.bf16.msra.mxu1 %v2937_v11 }
  0x42   :  { %735 = vmatmul.mubr.bf16.vlgmr.msra.gmra.mxu0 %v2910_v5 }
  0x43   :  { %888 = vmatmul.mubr.bf16.gmra.mxu1 %v3298_v7  ;;  %2729 = vmatpush3.bf16.msra.mxu0 %v2915_v6 }
  0x44   :  { %744 = vmatprep.mubr.bf16.mxu0 %v2917_v9  ;;  %897 = vmatprep.mubr.bf16.mxu1 %v2996_v1 }
  0x45   :  { %2730 = vmatprep.subr.bf16.mxu0 %v2922_v10 }
  0x47   :  { %2731 = vmatpush3.bf16.msra.mxu0 %v2922_v10 }
  0x48   :  { %2732 = vmatprep.subr.bf16.mxu0 %v2929_v12 }
  0x4a   :  { %745 = vmatmul.mubr.bf16.gmra.mxu0 %v2919_v13 }
  0x4b   :  { %898 = vmatmul.mubr.bf16.gmra.mxu1 %v3323_v14  ;;  %754 = vmatprep.mubr.bf16.mxu0 %v2924_v15 }
  0x4c   :  { %907 = vmatprep.mubr.bf16.mxu1 %v2996_v1  ;;  %2733 = vmatpush3.bf16.msra.mxu0 %v2929_v12 }
  0x4d   :  { %2734 = vmatprep.subr.bf16.mxu0 %v2936_v16 }
  0x50   :  { %2735 = vmatpush3.bf16.msra.mxu0 %v2936_v16 }
  0x51   :  { %2736 = vmatprep.subr.bf16.mxu0 %v2941_v17 }
  0x52   :  { %755 = vmatmul.mubr.bf16.gmra.mxu0 %v2926_v18 }
  0x53   :  { %908 = vmatmul.mubr.bf16.gmra.mxu1 %v2927_v19  ;;  %764 = vmatprep.mubr.bf16.mxu0 %v2931_v20 }
  0x54   :  { %917 = vmatprep.mubr.bf16.mxu1 %v2996_v1  ;;  %2737 = vmatpush3.bf16.msra.mxu0 %v2941_v17  ;;  %v2953_v1 = vld [vmem:[%s4395_s1 + $0x188] ss:$12 sps:$4 sm:$0xff]  }
  0x55   :  { %2738 = vmatprep.subr.bf16.mxu0 %v2945_v21 }
  0x58   :  { %2739 = vmatpush3.bf16.msra.mxu0 %v2945_v21  ;;  %v2957_v21 = vld [vmem:[%s4398_s5 + $0x70] sm:$0xff]  }
  0x59   :  { %2740 = vmatprep.subr.bf16.mxu0 %v2949_v22 }
  0x5a   :  { %765 = vmatmul.mubr.bf16.gmra.mxu0 %v2933_v23 }
  0x5b   :  { %918 = vmatmul.mubr.bf16.gmra.mxu1 %v2934_v24  ;;  %774 = vmatprep.mubr.bf16.mxu0 %v2938_v25 }
  0x5c   :  { %960 = vmatprep.mubr.bf16.mxu1 %v3238_v53  ;;  %2741 = vmatpush3.bf16.msra.mxu0 %v2949_v22  ;;  %v3431_v53 = vrot.slane %v3422_v50, %v3415_v48  ;;  %v2958_v22 = vld [vmem:[%s4398_s5 + $0xb0] sm:$0xff]  }
  0x5d   :  { %2742 = vmatprep.subr.bf16.mxu0 %v2953_v1 }
  0x60   :  { %2743 = vmatpush3.bf16.msra.mxu0 %v2953_v1 }
  0x62   :  { %775 = vmatmul.mubr.bf16.gmra.mxu0 %v2940_v26 }
  0x63   :  { %961 = vmatmul.mubr.bf16.vlgmr.msra.gmra.mxu1 %v2910_v5  ;;  %784 = vmatprep.mubr.bf16.mxu0 %v2942_v27 }
  0x64   :  { %968 = vmatprep.mubr.bf16.mxu1 %v2917_v9 }
  0x6a   :  { %785 = vmatmul.mubr.bf16.gmra.mxu0 %v2944_v28 }
  0x6b   :  { %969 = vmatmul.mubr.bf16.gmra.mxu1 %v2919_v13  ;;  %794 = vmatprep.mubr.bf16.mxu0 %v2946_v29  ;;  %v2954_v13 = vld [vmem:[%s4398_s5 + $0x78] sm:$0xff]  }
  0x6c   :  { %976 = vmatprep.mubr.bf16.mxu1 %v2924_v15  ;;  %v2955_v15 = vld [vmem:[%s4398_s5 + $0xb8] sm:$0xff]   ;;  %2632 = vmatprep.subr.bf16.mxu0 %v2954_v13 }
  0x6d   :  { %2760 = vmatprep.subr.bf16.mxu1 %v2955_v15 }
  0x6e   :  { %2761 = vmatpush3.bf16.msra.mxu1 %v2955_v15 }
  0x6f   :  { %2762 = vmatprep.subr.bf16.mxu1 %v2958_v22 }
  0x72   :  { %795 = vmatmul.mubr.bf16.gmra.mxu0 %v2948_v30  ;;  %2763 = vmatpush3.bf16.msra.mxu1 %v2958_v22 }
  0x73   :  { %977 = vmatmul.mubr.bf16.gmra.mxu1 %v2926_v18  ;;  %804 = vmatprep.mubr.bf16.mxu0 %v2950_v31  ;;  %v2956_v18 = vld [vmem:[%s4398_s5 + $0x38] sm:$0xff]  }
  0x74   :  { %984 = vmatprep.mubr.bf16.mxu1 %v2931_v20 }
  0x7a   :  { %805 = vmatmul.mubr.bf16.gmra.mxu0 %v2952_v32 }
  0x7b   :  { %985 = vmatmul.mubr.bf16.gmra.mxu1 %v2933_v23  ;;  %2744 = vmatprep.mubr.bf16.mxu0 %v3174_v35 }
  0x7c   :  { %992 = vmatprep.mubr.bf16.mxu1 %v2938_v25  ;;  %v2959_v25 = vld [vmem:[%s4398_s5 + $0x30] sm:$0xff]  }
  0x82   :  { %2745 = vmatmul.mubr.bf16.vlgmr.msra.gmra.mxu0 %v3205_v44 }
  0x83   :  { %993 = vmatmul.mubr.bf16.gmra.mxu1 %v2940_v26  ;;  %2748 = vmatprep.mubr.bf16.mxu0 %v3233_v52 }
  0x84   :  { %1000 = vmatprep.mubr.bf16.mxu1 %v2942_v27  ;;  %2633 = vmatpush3.bf16.msra.mxu0 %v2956_v18 }
  0x85   :  { %2634 = vmatprep.subr.bf16.mxu0 %v2957_v21 }
  0x88   :  { %2635 = vmatpush3.bf16.msra.mxu0 %v2959_v25 }
  0x8a   :  { %2749 = vmatmul.mubr.bf16.gmra.mxu0 %v3270_v62 }
  0x8b   :  { %1001 = vmatmul.mubr.bf16.gmra.mxu1 %v2944_v28  ;;  %2752 = vmatprep.mubr.bf16.mxu0 %v3298_v7 }
  0x8c   :  { %1008 = vmatprep.mubr.bf16.mxu1 %v2946_v29 }
  0x92   :  { %2753 = vmatmul.mubr.bf16.gmra.mxu0 %v3323_v14 }
  0x93   :  { %1009 = vmatmul.mubr.bf16.gmra.mxu1 %v2948_v30  ;;  %2756 = vmatprep.mubr.bf16.mxu0 %v2927_v19 }
  0x94   :  { %1016 = vmatprep.mubr.bf16.mxu1 %v2950_v31 }
  0x9a   :  { %2757 = vmatmul.mubr.bf16.gmra.mxu0 %v2934_v24 }
  0x9b   :  { %1017 = vmatmul.mubr.bf16.gmra.mxu1 %v2952_v32  ;;  %v3491_v32 = vsub.s32 2, %v3408_v45 }
  0xe3   :  { %v849_v33 = vpop.f32.mrf.mxu1 }
  0xe5   :  { %v851_v34 = vpop.f32.mrf.mxu1 }
  0xe7   :  { %v853_v35 = vpop.f32.mrf.mxu1 }
  0xe9   :  { %v3392_v36 = vpop.f32.mrf.mxu1 }
  0xeb   :  { %v3394_v37 = vpop.f32.mrf.mxu1 }
  0xed   :  { %v3396_v38 = vpop.f32.mrf.mxu1 }
  0xef   :  { %v3398_v39 = vpop.f32.mrf.mxu1 }
  0xf1   :  { %v3400_v40 = vpop.f32.mrf.mxu1 }
  0xf3   :  { %v3402_v41 = vpop.f32.mrf.mxu1 }
  0xf5   :  { %v3404_v43 = vpop.f32.mrf.mxu1 }
  0xf7   :  { %v3406_v44 = vpop.f32.mrf.mxu1 }
  0xf9   :  { %v3410_v46 = vpop.f32.mrf.mxu1 }
  0xfb   :  { %v3412_v47 = vpop.f32.mrf.mxu1 }
  0xfd   :  { %v3417_v49 = vpop.f32.mrf.mxu1 }
  0xff   :  { %v3427_v52 = vpop.f32.mrf.mxu1 }
 0x101   :  { %v3433_v54 = vpop.f32.mrf.mxu1 }
 0x102   :  { %v736_v56 = vpop.f32.mrf.mxu0 }
 0x103   :  { %v3439_v57 = vpop.f32.mrf.mxu1  ;;  %v737_v58 = vadd.f32 %v736_v56, %v3431_v53 }
 0x104   :  { %v738_v59 = vpop.f32.mrf.mxu0 }
 0x105   :  { %v3442_v60 = vpop.f32.mrf.mxu1  ;;  %v850_v61 = vadd.f32 %v849_v33, %v737_v58  ;;  %v739_v62 = vadd.f32 %v738_v59, %v3437_v55  ;;  %v2960_v33 = vld [vmem:[%s4398_s5 + $0x68] sm:$0xff]  }
 0x106   :  { %v740_v63 = vpop.f32.mrf.mxu0  ;;  %v2962_v58 = vld [vmem:[%s4398_s5 + $0x28] sm:$0xff]   ;;  %2636 = vmatprep.subr.bf16.mxu0 %v2960_v33 }
 0x107   :  { %v3445_v0 = vpop.f32.mrf.mxu1  ;;  %v3447_v2 = vadd.f32 %v851_v34, %v739_v62  ;;  %v741_v14 = vadd.f32 %v740_v63, %v3431_v53  ;;  %v2961_v34 = vld [vmem:[%s4398_s5 + $0xa8] sm:$0xff]   ;;  %2637 = vmatpush3.bf16.msra.mxu0 %v2962_v58 }
 0x108   :  { %v742_v3 = vpop.f32.mrf.mxu0  ;;  %2764 = vmatprep.subr.bf16.mxu1 %v2961_v34 }
 0x109   :  { %v3449_v4 = vpop.f32.mrf.mxu1  ;;  %v854_v23 = vadd.f32 %v853_v35, %v741_v14  ;;  %v743_v24 = vadd.f32 %v742_v3, %v3437_v55  ;;  %v3509_v3 = vmax.f32 %v850_v61, 0.0  ;;  %2765 = vmatpush3.bf16.msra.mxu1 %v2961_v34  ;;  %v2964_v61 = vld [vmem:[%s4398_s5 + $0xa0] sm:$0xff]   ;;  %v3529_v14 = vmax.f32 %v3447_v2, 0.0  ;;  %v2968_v34 = vld [vmem:[%s4398_s5 + $0x18] sm:$0xff]  }
 0x10a   :  { %v746_v5 = vpop.f32.mrf.mxu0  ;;  %2766 = vmatprep.subr.bf16.mxu1 %v2964_v61 }
 0x10b   :  { %v3451_v6 = vpop.f32.mrf.mxu1  ;;  %v747_v1 = vadd.f32 %v746_v5, %v3431_v53  ;;  %v3499_v35 = vmax.f32 %v854_v23, 0.0  ;;  %v856_v42 = vadd.f32 %v3392_v36, %v743_v24  ;;  %4428 = vst [vmem:[#allocation3_spill] sm:$0xff] %v3509_v3  ;;  %v3541_v23 = vrot.slane %v3422_v50, %v3491_v32  ;;  %v2967_v50 = vld [vmem:[%s4398_s5 + $0x98] sm:$0xff]  }
 0x10c   :  { %v748_v7 = vpop.f32.mrf.mxu0 }
 0x10d   :  { %v3453_v8 = vpop.f32.mrf.mxu1  ;;  %v749_v28 = vadd.f32 %v748_v7, %v3437_v55  ;;  %4427 = vst [vmem:[#allocation2_spill] sm:$0xff] %v3499_v35  ;;  %v860_v59 = vadd.f32 %v3394_v37, %v747_v1  ;;  %v2963_v37 = vld [vmem:[%s4398_s5 + $0x60] sm:$0xff]   ;;  %v3522_v13 = vmax.f32 %v856_v42, 0.0  ;;  %v1236_v22 = vmul.f32 %v3499_v35, %v3499_v35  ;;  %2767 = vmatpush3.bf16.msra.mxu1 %v2964_v61 }
 0x10e   :  { %v750_v9 = vpop.f32.mrf.mxu0  ;;  %2638 = vmatprep.subr.bf16.mxu0 %v2963_v37  ;;  %v1234_v42 = vmul.f32 %v3529_v14, %v3529_v14  ;;  %2768 = vmatprep.subr.bf16.mxu1 %v2967_v50 }
 0x10f   :  { %v3455_v10 = vpop.f32.mrf.mxu1  ;;  %v751_v29 = vadd.f32 %v750_v9, %v3431_v53  ;;  %v862_v5 = vadd.f32 %v3396_v38, %v749_v28  ;;  %4429 = vst [vmem:[#allocation4_spill] sm:$0xff] %v3522_v13  ;;  %v3531_v15 = vmax.f32 %v860_v59, 0.0 }
 0x110   :  { %v752_v11 = vpop.f32.mrf.mxu0 }
 0x111   :  { %v3457_v12 = vpop.f32.mrf.mxu1  ;;  %v753_v56 = vadd.f32 %v752_v11, %v3437_v55  ;;  %v864_v7 = vadd.f32 %v3398_v39, %v751_v29  ;;  %v2965_v39 = vld [vmem:[%s4398_s5 + $0x20] sm:$0xff]   ;;  %4430 = vst [vmem:[#allocation5_spill] sm:$0xff] %v3531_v15  ;;  %v3543_v2 = vmax.f32 %v862_v5, 0.0  ;;  %v1233_v29 = vmul.f32 %v3509_v3, %v3509_v3  ;;  %2769 = vmatpush3.bf16.msra.mxu1 %v2967_v50 }
 0x112   :  { %v756_v16 = vpop.f32.mrf.mxu0  ;;  %2639 = vmatpush3.bf16.msra.mxu0 %v2965_v39 }
 0x113   :  { %v3466_v17 = vpop.f32.mrf.mxu1  ;;  %v757_v36 = vadd.f32 %v756_v16, %v3431_v53  ;;  %v866_v38 = vadd.f32 %v3400_v40, %v753_v56  ;;  %4431 = vst [vmem:[#allocation6_spill] sm:$0xff] %v3543_v2  ;;  %v3545_v24 = vmax.f32 %v864_v7, 0.0  ;;  %v1239_v56 = vmul.f32 %v3531_v15, %v3531_v15 }
 0x114   :  { %v758_v19 = vpop.f32.mrf.mxu0  ;;  %v1281_v7 = vadd.f32 %v1236_v22, %v1233_v29  ;;  %v1240_v61 = vmul.f32 %v3543_v2, %v3543_v2  ;;  %v1191_v22 = vadd.f32 %v3522_v13, %v3529_v14 }
 0x115   :  { %v3471_v20 = vpop.f32.mrf.mxu1  ;;  %v759_v16 = vadd.f32 %v758_v19, %v3437_v55  ;;  %4432 = vst [vmem:[#allocation7_spill] sm:$0xff] %v3545_v24  ;;  %v870_v19 = vadd.f32 %v3402_v41, %v757_v36  ;;  %v1237_v41 = vmul.f32 %v3522_v13, %v3522_v13  ;;  %v1242_v50 = vmul.f32 %v3545_v24, %v3545_v24 }
 0x116   :  { %v760_v26 = vpop.f32.mrf.mxu0 }
 0x117   :  { %v3484_v27 = vpop.f32.mrf.mxu1  ;;  %v761_v40 = vadd.f32 %v760_v26, %v3431_v53  ;;  %v2966_v26 = vld [vmem:[%s4398_s5 + $0x58] sm:$0xff]   ;;  %v872_v58 = vadd.f32 %v3404_v43, %v759_v16 }
 0x118   :  { %v762_v30 = vpop.f32.mrf.mxu0  ;;  %2640 = vmatprep.subr.bf16.mxu0 %v2966_v26 }
 0x119   :  { %v3488_v31 = vpop.f32.mrf.mxu1  ;;  %v763_v25 = vadd.f32 %v762_v30, %v3437_v55  ;;  %v3561_v30 = vmax.f32 %v866_v38, 0.0  ;;  %v874_v36 = vadd.f32 %v3406_v44, %v761_v40  ;;  %v3580_v38 = vmax.f32 %v870_v19, 0.0  ;;  %2641 = vmatpush3.bf16.msra.mxu0 %v2968_v34  ;;  %v2969_v44 = vld [vmem:[%s4398_s5 + $0x50] sm:$0xff]  }
 0x11a   :  { %v766_v62 = vpop.f32.mrf.mxu0  ;;  %v1302_v40 = vadd.f32 %v1237_v41, %v1234_v42  ;;  %v2971_v19 = vld [vmem:[%s4398_s5 + $0x10] sm:$0xff]   ;;  %v3603_v34 = vmax.f32 %v872_v58, 0.0  ;;  %2642 = vmatprep.subr.bf16.mxu0 %v2969_v44  ;;  %v2973_v58 = vld [vmem:[%s4398_s5 + $0x88] sm:$0xff]  }
 0x11b   :  { %v3507_v63 = vpop.f32.mrf.mxu1  ;;  %4433 = vst [vmem:[#allocation8_spill] sm:$0xff] %v3561_v30  ;;  %v767_v33 = vadd.f32 %v766_v62, %v3431_v53  ;;  %v1170_v62 = vadd.f32 %v3499_v35, %v3509_v3  ;;  %4434 = vst [vmem:[#allocation9_spill] sm:$0xff] %v3580_v38  ;;  %v876_v43 = vadd.f32 %v3410_v46, %v763_v25  ;;  %v3608_v41 = vmax.f32 %v874_v36, 0.0 }
 0x11c   :  { %v768_v9 = vpop.f32.mrf.mxu0  ;;  %v1282_v25 = vadd.f32 %v1281_v7, %v1239_v56  ;;  %v1243_v29 = vmul.f32 %v3561_v30, %v3561_v30  ;;  %4435 = vst [vmem:[#allocation10_spill] sm:$0xff] %v3603_v34  ;;  %v2972_v56 = vld [vmem:[%s4398_s5 + $0x48] sm:$0xff]   ;;  %v1245_v7 = vmul.f32 %v3580_v38, %v3580_v38 }
 0x11d   :  { %v3514_v11 = vpop.f32.mrf.mxu1  ;;  %v769_v37 = vadd.f32 %v768_v9, %v3437_v55  ;;  %v2970_v9 = vld [vmem:[%s4398_s5 + $0x90] sm:$0xff]   ;;  %v1171_v46 = vadd.f32 %v1170_v62, %v3531_v15  ;;  %v1303_v62 = vadd.f32 %v1302_v40, %v1240_v61  ;;  %v3620_v44 = vmax.f32 %v876_v43, 0.0  ;;  %2643 = vmatpush3.bf16.msra.mxu0 %v2971_v19 }
 0x11e   :  { %v770_v18 = vpop.f32.mrf.mxu0  ;;  %2770 = vmatprep.subr.bf16.mxu1 %v2970_v9  ;;  %2644 = vmatprep.subr.bf16.mxu0 %v2972_v56  ;;  %v1246_v15 = vmul.f32 %v3603_v34, %v3603_v34 }
 0x11f   :  { %v3534_v21 = vpop.f32.mrf.mxu1  ;;  %v771_v39 = vadd.f32 %v770_v18, %v3431_v53  ;;  %v880_v18 = vadd.f32 %v3412_v47, %v767_v33  ;;  %v1192_v47 = vadd.f32 %v1191_v22, %v3543_v2  ;;  %v882_v33 = vadd.f32 %v3417_v49, %v769_v37  ;;  %2771 = vmatpush3.bf16.msra.mxu1 %v2970_v9  ;;  %v2975_v37 = vld [vmem:[%s4398_s5 + $0x40] sm:$0xff]  }
 0x120   :  { %v772_v1 = vpop.f32.mrf.mxu0  ;;  %v1172_v61 = vadd.f32 %v1171_v46, %v3545_v24  ;;  %2772 = vmatprep.subr.bf16.mxu1 %v2973_v58  ;;  %v1283_v9 = vadd.f32 %v1282_v25, %v1242_v50  ;;  %v1304_v19 = vadd.f32 %v1303_v62, %v1243_v29 }
 0x121   :  { %v3549_v28 = vpop.f32.mrf.mxu1  ;;  %v773_v42 = vadd.f32 %v772_v1, %v3437_v55  ;;  %v884_v36 = vadd.f32 %v3427_v52, %v771_v39  ;;  %v2974_v1 = vld [vmem:[%s4398_s5 + $0x8] sm:$0xff]   ;;  %v1193_v43 = vadd.f32 %v1192_v47, %v3561_v30  ;;  %v3633_v40 = vmax.f32 %v880_v18, 0.0  ;;  %v2976_v39 = vld [vmem:[%s4398_s5 + $0x80] sm:$0xff]  }
 0x122   :  { %v776_v59 = vpop.f32.mrf.mxu0  ;;  %v1173_v18 = vadd.f32 %v1172_v61, %v3580_v38  ;;  %v3647_v47 = vmax.f32 %v882_v33, 0.0  ;;  %v1284_v30 = vadd.f32 %v1283_v9, %v1245_v7  ;;  %2645 = vmatpush3.bf16.msra.mxu0 %v2974_v1  ;;  %v2977_v61 = vld [vmem:[%s4398_s5] sm:$0xff]   ;;  %v1249_v33 = vmul.f32 %v3620_v44, %v3620_v44 }
 0x123   :  { %v3572_v5 = vpop.f32.mrf.mxu1  ;;  %v777_v52 = vadd.f32 %v776_v59, %v3431_v53  ;;  %v1248_v59 = vmul.f32 %v3608_v41, %v3608_v41  ;;  %v886_v56 = vadd.f32 %v3433_v54, %v773_v42  ;;  %v1194_v25 = vadd.f32 %v1193_v43, %v3603_v34  ;;  %2773 = vmatpush3.bf16.msra.mxu1 %v2973_v58 }
 0x124   :  { %v778_v16 = vpop.f32.mrf.mxu0  ;;  %v3651_v50 = vmax.f32 %v884_v36, 0.0  ;;  %v1251_v54 = vmul.f32 %v3633_v40, %v3633_v40  ;;  %2646 = vmatprep.subr.bf16.mxu0 %v2975_v37  ;;  %2774 = vmatprep.subr.bf16.mxu1 %v2976_v39  ;;  %v1174_v7 = vadd.f32 %v1173_v18, %v3608_v41  ;;  %v1252_v34 = vmul.f32 %v3647_v47, %v3647_v47 }
 0x125   :  { %v3584_v26 = vpop.f32.mrf.mxu1  ;;  %v779_v2 = vadd.f32 %v778_v16, %v3437_v55  ;;  %v890_v42 = vadd.f32 %v3439_v57, %v777_v52  ;;  %v1285_v9 = vadd.f32 %v1284_v30, %v1248_v59  ;;  %v1195_v38 = vadd.f32 %v1194_v25, %v3620_v44 }
 0x126   :  { %v780_v35 = vpop.f32.mrf.mxu0  ;;  %v3672_v13 = vmax.f32 %v886_v56, 0.0  ;;  %v1254_v57 = vmul.f32 %v3651_v50, %v3651_v50  ;;  %2647 = vmatpush3.bf16.msra.mxu0 %v2977_v61  ;;  %v1175_v37 = vadd.f32 %v1174_v7, %v3633_v40 }
 0x127   :  { %v3605_v3 = vpop.f32.mrf.mxu1  ;;  %v781_v29 = vadd.f32 %v780_v35, %v3431_v53  ;;  %v1305_v35 = vadd.f32 %v1304_v19, %v1246_v15  ;;  %v892_v36 = vadd.f32 %v3442_v60, %v779_v2  ;;  %2775 = vmatpush3.bf16.msra.mxu1 %v2976_v39  ;;  %v1286_v52 = vadd.f32 %v1285_v9, %v1251_v54 }
 0x128   :  { %v782_v22 = vpop.f32.mrf.mxu0  ;;  %v3681_v19 = vmax.f32 %v890_v42, 0.0  ;;  %v1196_v18 = vadd.f32 %v1195_v38, %v3647_v47  ;;  %v1255_v39 = vmul.f32 %v3672_v13, %v3672_v13  ;;  %v1176_v38 = vadd.f32 %v1175_v37, %v3651_v50 }
 0x129   :  { %v3623_v49 = vpop.f32.mrf.mxu1  ;;  %v783_v58 = vadd.f32 %v782_v22, %v3437_v55  ;;  %v894_v15 = vadd.f32 %v3445_v0, %v781_v29  ;;  %v1306_v30 = vadd.f32 %v1305_v35, %v1249_v33  ;;  %v3684_v59 = vmax.f32 %v892_v36, 0.0 }
 0x12a   :  { %v786_v46 = vpop.f32.mrf.mxu0  ;;  %v2570_v0 = vadd.f32 %v3584_v26, %v3572_v5  ;;  %v1287_v54 = vadd.f32 %v1286_v52, %v1254_v57  ;;  %v1197_v35 = vadd.f32 %v1196_v18, %v3672_v13 }
 0x12b   :  { %v3642_v24 = vpop.f32.mrf.mxu1  ;;  %v787_v60 = vadd.f32 %v786_v46, %v3431_v53  ;;  %v896_v46 = vadd.f32 %v3449_v4, %v783_v58  ;;  %v1307_v29 = vadd.f32 %v1306_v30, %v1252_v34  ;;  %v3696_v42 = vmax.f32 %v894_v15, 0.0 }
 0x12c   :  { %v788_v16 = vpop.f32.mrf.mxu0  ;;  %v1257_v34 = vmul.f32 %v3681_v19, %v3681_v19  ;;  %v1258_v36 = vmul.f32 %v3684_v59, %v3684_v59  ;;  %v3715_v57 = vadd.f32 %v2570_v0, %v3541_v23  ;;  %v1198_v37 = vadd.f32 %v1197_v35, %v3684_v59 }
 0x12d   :  { %v3654_v62 = vpop.f32.mrf.mxu1  ;;  %v789_v61 = vadd.f32 %v788_v16, %v3437_v55  ;;  %v900_v5 = vadd.f32 %v3451_v6, %v787_v60  ;;  %v3708_v58 = vmax.f32 %v896_v46, 0.0  ;;  %v2573_v6 = vadd.f32 %v3623_v49, %v3605_v3 }
 0x12e   :  { %v790_v1 = vpop.f32.mrf.mxu0  ;;  %v1308_v15 = vadd.f32 %v1307_v29, %v1255_v39  ;;  %v1177_v60 = vadd.f32 %v1176_v38, %v3681_v19  ;;  %v1260_v52 = vmul.f32 %v3696_v42, %v3696_v42  ;;  %v1288_v0 = vadd.f32 %v1287_v54, %v1257_v34 }
 0x12f   :  { %v3667_v43 = vpop.f32.mrf.mxu1  ;;  %v791_v33 = vadd.f32 %v790_v1, %v3431_v53  ;;  %v3723_v18 = vmax.f32 %v900_v5, 0.0  ;;  %v1261_v39 = vmul.f32 %v3708_v58, %v3708_v58  ;;  %v3738_v5 = vadd.f32 %v2573_v6, %v3541_v23 }
 0x130   :  { %v792_v2 = vpop.f32.mrf.mxu0  ;;  %v1178_v54 = vadd.f32 %v1177_v60, %v3696_v42  ;;  %v1289_v35 = vadd.f32 %v1288_v0, %v1260_v52  ;;  %v1199_v34 = vadd.f32 %v1198_v37, %v3708_v58 }
 0x131   :  { %v3678_v22 = vpop.f32.mrf.mxu1  ;;  %v793_v7 = vadd.f32 %v792_v2, %v3437_v55  ;;  %v902_v2 = vadd.f32 %v3453_v8, %v789_v61  ;;  %v904_v30 = vadd.f32 %v3455_v10, %v791_v33  ;;  %v1309_v10 = vadd.f32 %v1308_v15, %v1258_v36 }
 0x132   :  { %v796_v56 = vpop.f32.mrf.mxu0  ;;  %v2576_v61 = vadd.f32 %v3654_v62, %v3642_v24  ;;  %v1263_v24 = vmul.f32 %v3723_v18, %v3723_v18  ;;  %v1179_v36 = vadd.f32 %v1178_v54, %v3723_v18 }
 0x133   :  { %v3689_v25 = vpop.f32.mrf.mxu1  ;;  %v797_v16 = vadd.f32 %v796_v56, %v3431_v53  ;;  %v906_v56 = vadd.f32 %v3457_v12, %v793_v7  ;;  %v3741_v12 = vmax.f32 %v902_v2, 0.0  ;;  %v1310_v60 = vadd.f32 %v1309_v10, %v1261_v39 }
 0x134   :  { %v798_v26 = vpop.f32.mrf.mxu0 }
 0x135   :  { %v3699_v4 = vpop.f32.mrf.mxu1  ;;  %v910_v29 = vadd.f32 %v3466_v17, %v797_v16  ;;  %v799_v8 = vadd.f32 %v798_v26, %v3437_v55  ;;  %v3743_v17 = vmax.f32 %v904_v30, 0.0  ;;  %v3751_v6 = vmax.f32 %v906_v56, 0.0 }
 0x136   :  { %v800_v1 = vpop.f32.mrf.mxu0 }
 0x137   :  { %v3712_v9 = vpop.f32.mrf.mxu1  ;;  %v801_v3 = vadd.f32 %v800_v1, %v3431_v53  ;;  %4436 = vst [vmem:[#allocation11_spill] sm:$0xff] %v3743_v17  ;;  %v3753_v1 = vmax.f32 %v910_v29, 0.0  ;;  %v912_v15 = vadd.f32 %v3471_v20, %v799_v8  ;;  %v1180_v0 = vadd.f32 %v1179_v36, %v3743_v17 }
 0x138   :  { %v802_v49 = vpop.f32.mrf.mxu0  ;;  %v1266_v56 = vmul.f32 %v3743_v17, %v3743_v17  ;;  %v2579_v20 = vadd.f32 %v3678_v22, %v3667_v43  ;;  %v1290_v29 = vadd.f32 %v1289_v35, %v1263_v24 }
 0x139   :  { %v3726_v46 = vpop.f32.mrf.mxu1  ;;  %v914_v62 = vadd.f32 %v3484_v27, %v801_v3  ;;  %4437 = vst [vmem:[#allocation12_spill] sm:$0xff] %v3753_v1  ;;  %v803_v2 = vadd.f32 %v802_v49, %v3437_v55  ;;  %v971_v27 = vadd.f32 %v2576_v61, %v3541_v23  ;;  %v1264_v3 = vmul.f32 %v3741_v12, %v3741_v12 }
 0x13a   :  { %v806_v33 = vpop.f32.mrf.mxu0  ;;  %v1267_v61 = vmul.f32 %v3751_v6, %v3751_v6  ;;  %v3775_v54 = vmax.f32 %v912_v15, 0.0  ;;  %v974_v15 = vadd.f32 %v2579_v20, %v3541_v23 }
 0x13b   :  { %v3735_v38 = vpop.f32.mrf.mxu1  ;;  %v807_v26 = vadd.f32 %v806_v33, %v3431_v53  ;;  %v3768_v49 = vmax.f32 %v914_v62, 0.0  ;;  %v1181_v33 = vadd.f32 %v1180_v0, %v3753_v1  ;;  %v916_v43 = vadd.f32 %v3488_v31, %v803_v2 }
 0x13c   :  { %v808_v7 = vpop.f32.mrf.mxu0  ;;  %4439 = vst [vmem:[#allocation14_spill] sm:$0xff] %v3775_v54  ;;  %v1311_v36 = vadd.f32 %v1310_v60, %v1264_v3  ;;  %v1269_v0 = vmul.f32 %v3753_v1, %v3753_v1 }
 0x13d   :  { %v2587_v16 = vpop.f32.mrf.mxu1  ;;  %v920_v30 = vadd.f32 %v3507_v63, %v807_v26  ;;  %4438 = vst [vmem:[#allocation13_spill] sm:$0xff] %v3768_v49  ;;  %v809_v63 = vadd.f32 %v808_v7, %v3437_v55  ;;  %v2582_v26 = vadd.f32 %v3699_v4, %v3689_v25  ;;  %v1200_v7 = vadd.f32 %v1199_v34, %v3741_v12 }
 0x13e   :  { %v810_v37 = vpop.f32.mrf.mxu0  ;;  %v1182_v25 = vadd.f32 %v1181_v33, %v3768_v49  ;;  %v1270_v34 = vmul.f32 %v3775_v54, %v3775_v54  ;;  %v1312_v3 = vadd.f32 %v1311_v36, %v1267_v61  ;;  %v2588_v33 = vadd.f32 %v2587_v16, %v3735_v38 }
 0x13f   :  { %v3758_v52 = vpop.f32.mrf.mxu1  ;;  %v811_v8 = vadd.f32 %v810_v37, %v3431_v53  ;;  %v3780_v22 = vmax.f32 %v920_v30, 0.0  ;;  %v1291_v37 = vadd.f32 %v1290_v29, %v1266_v56  ;;  %v922_v31 = vadd.f32 %v3514_v11, %v809_v63 }
 0x140   :  { %v812_v10 = vpop.f32.mrf.mxu0  ;;  %v979_v30 = vadd.f32 %v2582_v26, %v3541_v23  ;;  %v3797_v56 = vmax.f32 %v916_v43, 0.0 }
 0x141   :  { %v2590_v39 = vpop.f32.mrf.mxu1  ;;  %4440 = vst [vmem:[#allocation15_spill] sm:$0xff] %v3780_v22  ;;  %v924_v35 = vadd.f32 %v3534_v21, %v811_v8  ;;  %v813_v53 = vadd.f32 %v812_v10, %v3437_v55  ;;  %v1201_v55 = vadd.f32 %v1200_v7, %v3751_v6  ;;  %v1183_v20 = vadd.f32 %v1182_v25, %v3780_v22 }
 0x142   :  { %v2746_v62 = vpop.f32.mrf.mxu0  ;;  %4442 = vst [vmem:[#allocation17_spill] sm:$0xff] %v3797_v56  ;;  %v1272_v8 = vmul.f32 %v3768_v49, %v3768_v49  ;;  %v2585_v10 = vadd.f32 %v3726_v46, %v3712_v9  ;;  %v3807_v26 = vmax.f32 %v922_v31, 0.0  ;;  %v1273_v46 = vmul.f32 %v3797_v56, %v3797_v56 }
 0x143   :  { %v2592_v24 = vpop.f32.mrf.mxu1  ;;  %v3790_v4 = vmax.f32 %v924_v35, 0.0  ;;  %v926_v11 = vadd.f32 %v3549_v28, %v813_v53  ;;  %v1292_v35 = vadd.f32 %v1291_v37, %v1269_v0  ;;  %v1202_v61 = vadd.f32 %v1201_v55, %v3775_v54 }
 0x144   :  { %v1059_v2 = vpop.f32.mrf.mxu0  ;;  %4443 = vst [vmem:[#allocation18_spill] sm:$0xff] %v3807_v26  ;;  %v1313_v53 = vadd.f32 %v1312_v3, %v1270_v34  ;;  %v1275_v38 = vmul.f32 %v3780_v22, %v3780_v22 }
 0x145   :  { %4441 = vst [vmem:[#allocation16_spill] sm:$0xff] %v3790_v4  ;;  %v2593_v21 = vpop.f32.mrf.mxu1  ;;  %v1060_v60 = vadd.f32 %v1059_v2, %v3715_v57  ;;  %v1068_v57 = vadd.f32 %v2746_v62, %v971_v27  ;;  %v1184_v43 = vadd.f32 %v1183_v20, %v3790_v4  ;;  %v1203_v9 = vadd.f32 %v1202_v61, %v3797_v56 }
 0x146   :  { %v2747_v63 = vpop.f32.mrf.mxu0  ;;  %v3818_v16 = vmax.f32 %v926_v11, 0.0  ;;  %v1293_v37 = vadd.f32 %v1292_v35, %v1272_v8  ;;  %v1278_v34 = vmul.f32 %v3790_v4, %v3790_v4  ;;  %v1276_v35 = vmul.f32 %v3807_v26, %v3807_v26 }
 0x147   :  { %v2595_v29 = vpop.f32.mrf.mxu1  ;;  %v3810_v36 = vmax.f32 %v1060_v60, 0.0  ;;  %v1071_v25 = vadd.f32 %v2747_v63, %v974_v15  ;;  %v3820_v0 = vmax.f32 %v1068_v57, 0.0  ;;  %v987_v15 = vadd.f32 %v2588_v33, %v3541_v23 }
 0x148   :  { %v1062_v28 = vpop.f32.mrf.mxu0  ;;  %4444 = vst [vmem:[#allocation19_spill] sm:$0xff] %v3818_v16  ;;  %v1185_v55 = vrot.slane %v1184_v43, 4  ;;  %v2591_v60 = vadd.f32 %v2590_v39, %v3758_v52  ;;  %v1294_v57 = vadd.f32 %v1293_v37, %v1275_v38  ;;  %v2594_v52 = vadd.f32 %v2593_v21, %v2592_v24 }
 0x149   :  { %v2596_v7 = vpop.f32.mrf.mxu1  ;;  %v1063_v2 = vadd.f32 %v1062_v28, %v3738_v5  ;;  %v1204_v5 = vadd.f32 %v1203_v9, %v3807_v26  ;;  %v1235_v11 = vmul.f32 %v3810_v36, %v3810_v36  ;;  %v3831_v63 = vmax.f32 %v1071_v25, 0.0 }
 0x14a   :  { %v2750_v62 = vpop.f32.mrf.mxu0  ;;  %v1314_v22 = vadd.f32 %v1313_v53, %v1273_v46  ;;  %v1186_v49 = vadd.f32 %v1185_v55, %v1184_v43  ;;  %v1295_v1 = vadd.f32 %v1294_v57, %v1278_v34  ;;  %v1279_v38 = vmul.f32 %v3818_v16, %v3818_v16 }
 0x14b   :  { %v2598_v27 = vpop.f32.mrf.mxu1  ;;  %v3822_v31 = vmax.f32 %v1063_v2, 0.0  ;;  %v1205_v61 = vadd.f32 %v1204_v5, %v3818_v16  ;;  %v1241_v2 = vmul.f32 %v3820_v0, %v3820_v0  ;;  %v1244_v24 = vmul.f32 %v3831_v63, %v3831_v63 }
 0x14c   :  { %v1075_v20 = vpop.f32.mrf.mxu0  ;;  %v1315_v54 = vadd.f32 %v1314_v22, %v1276_v35  ;;  %v2597_v46 = vadd.f32 %v2596_v7, %v2595_v29  ;;  %v982_v34 = vadd.f32 %v2585_v10, %v3541_v23 }
 0x14d   :  { %v2599_v3 = vpop.f32.mrf.mxu1  ;;  %v1212_v8 = vadd.f32 %v3822_v31, %v3810_v36  ;;  %v1238_v33 = vmul.f32 %v3822_v31, %v3822_v31  ;;  %v1076_v4 = vadd.f32 %v1075_v20, %v979_v30  ;;  %v990_v30 = vadd.f32 %v2591_v60, %v3541_v23 }
 0x14e   :  { %v2751_v28 = vpop.f32.mrf.mxu0  ;;  %v995_v20 = vadd.f32 %v2594_v52, %v3541_v23  ;;  %v1316_v57 = vadd.f32 %v1315_v54, %v1279_v38  ;;  %v998_v38 = vadd.f32 %v2597_v46, %v3541_v23 }
 0x14f   :  { %v2601_v39 = vpop.f32.mrf.mxu1  ;;  %v1213_v25 = vadd.f32 %v1212_v8, %v3820_v0  ;;  %v1323_v9 = vadd.f32 %v1238_v33, %v1235_v11  ;;  %v3847_v5 = vmax.f32 %v1076_v4, 0.0  ;;  %v1206_v8 = vrot.slane %v1205_v61, 4 }
 0x150   :  { %v1078_v26 = vpop.f32.mrf.mxu0  ;;  %v1084_v11 = vadd.f32 %v2750_v62, %v987_v15  ;;  %v1296_v33 = vrot.slane %v1295_v1, 4  ;;  %v1087_v4 = vadd.f32 %v2751_v28, %v990_v30 }
 0x151   :  { %v2602_v37 = vpop.f32.mrf.mxu1  ;;  %v1324_v21 = vadd.f32 %v1323_v9, %v1241_v2  ;;  %v1214_v56 = vadd.f32 %v1213_v25, %v3831_v63  ;;  %v2600_v2 = vadd.f32 %v2599_v3, %v2598_v27  ;;  %v1187_v25 = vrot.slane %v1186_v49, 2 }
 0x152   :  { %v2754_v53 = vpop.f32.mrf.mxu0  ;;  %v1247_v62 = vmul.f32 %v3847_v5, %v3847_v5  ;;  %v1079_v15 = vadd.f32 %v1078_v26, %v982_v34  ;;  %v1207_v60 = vadd.f32 %v1206_v8, %v1205_v61  ;;  %v3856_v29 = vmax.f32 %v1084_v11, 0.0 }
 0x153   :  { %v2604_v43 = vpop.f32.mrf.mxu1  ;;  %v1325_v55 = vadd.f32 %v1324_v21, %v1244_v24  ;;  %v1215_v22 = vadd.f32 %v1214_v56, %v3847_v5  ;;  %v2603_v52 = vadd.f32 %v2602_v37, %v2601_v39  ;;  %v1317_v27 = vrot.slane %v1316_v57, 4 }
 0x154   :  { %v1091_v16 = vpop.f32.mrf.mxu0  ;;  %v3858_v24 = vmax.f32 %v1079_v15, 0.0  ;;  %v3860_v3 = vmax.f32 %v1087_v4, 0.0  ;;  %v1003_v28 = vadd.f32 %v2600_v2, %v3541_v23  ;;  %v3864_v26 = vadd.f32 %v1187_v25, %v1186_v49 }
 0x155   :  { %v2605_v9 = vpop.f32.mrf.mxu1  ;;  %v1326_v35 = vadd.f32 %v1325_v55, %v1247_v62  ;;  %v1092_v54 = vadd.f32 %v1091_v16, %v995_v20  ;;  %v1297_v61 = vadd.f32 %v1296_v33, %v1295_v1  ;;  %v1208_v37 = vrot.slane %v1207_v60, 2 }
 0x156   :  { %v2755_v10 = vpop.f32.mrf.mxu0  ;;  %v1216_v8 = vadd.f32 %v1215_v22, %v3858_v24  ;;  %v1250_v39 = vmul.f32 %v3858_v24, %v3858_v24  ;;  %v1253_v16 = vmul.f32 %v3856_v29, %v3856_v29  ;;  %v1100_v11 = vadd.f32 %v2754_v53, %v1003_v28 }
 0x157   :  { %v2607_v7 = vpop.f32.mrf.mxu1  ;;  %v2606_v30 = vadd.f32 %v2605_v9, %v2604_v43  ;;  %v3872_v2 = vmax.f32 %v1092_v54, 0.0  ;;  %v1006_v1 = vadd.f32 %v2603_v52, %v3541_v23  ;;  %v1318_v49 = vadd.f32 %v1317_v27, %v1316_v57 }
 0x158   :  { %v1094_v21 = vpop.f32.mrf.mxu0  ;;  %v1217_v20 = vadd.f32 %v1216_v8, %v3856_v29  ;;  %v1327_v46 = vadd.f32 %v1326_v35, %v1250_v39  ;;  %v1256_v33 = vmul.f32 %v3860_v3, %v3860_v3  ;;  %v1209_v28 = vadd.f32 %v1208_v37, %v1207_v60 }
 0x159   :  { %v2608_v56 = vpop.f32.mrf.mxu1  ;;  %v1095_v25 = vadd.f32 %v1094_v21, %v998_v38  ;;  %v1103_v53 = vadd.f32 %v2755_v10, %v1006_v1  ;;  %v3878_v8 = vmax.f32 %v1100_v11, 0.0  ;;  %v1011_v52 = vadd.f32 %v2606_v30, %v3541_v23 }
 0x15a   :  { %v2758_v34 = vpop.f32.mrf.mxu0  ;;  %v2609_v4 = vadd.f32 %v2608_v56, %v2607_v7  ;;  %v1328_v15 = vadd.f32 %v1327_v46, %v1253_v16  ;;  %v1218_v43 = vadd.f32 %v1217_v20, %v3860_v3  ;;  %v1259_v7 = vmul.f32 %v3872_v2, %v3872_v2 }
 0x15b   :  { %v2610_v55 = vpop.f32.mrf.mxu1  ;;  %v3880_v35 = vmax.f32 %v1095_v25, 0.0  ;;  %v1319_v21 = vrot.slane %v1318_v49, 2  ;;  %v3890_v30 = vmax.f32 %v1103_v53, 0.0  ;;  %v1298_v46 = vrot.slane %v1297_v61, 2 }
 0x15c   :  { %v1107_v62 = vpop.f32.mrf.mxu0  ;;  %v1219_v27 = vadd.f32 %v1218_v43, %v3872_v2  ;;  %v1329_v56 = vadd.f32 %v1328_v15, %v1256_v33  ;;  %v1014_v37 = vadd.f32 %v2609_v4, %v3541_v23  ;;  %v1210_v43 = vrot.slane %v1209_v28, 1 }
 0x15d   :  { %v2611_v22 = vpop.f32.mrf.mxu1  ;;  %v1262_v60 = vmul.f32 %v3880_v35, %v3880_v35  ;;  %v1108_v10 = vadd.f32 %v1107_v62, %v1011_v52  ;;  %v1268_v52 = vmul.f32 %v3890_v30, %v3890_v30 }
 0x15e   :  { %v2612_v9 = vadd.f32 %v2611_v22, %v2610_v55  ;;  %v2759_v54 = vpop.f32.mrf.mxu0  ;;  %v1330_v11 = vadd.f32 %v1329_v56, %v1259_v7  ;;  %v1220_v55 = vadd.f32 %v1219_v27, %v3880_v35  ;;  %v1265_v22 = vmul.f32 %v3878_v8, %v3878_v8 }
 0x15f   :  { %v2613_v57 = vpop.f32.mrf.mxu1  ;;  %v3893_v33 = vmax.f32 %v1108_v10, 0.0  ;;  %v1189_v7 = vrot.slane %v3864_v26, 1  ;;  %v1299_v56 = vadd.f32 %v1298_v46, %v1297_v61 }
 0x160   :  { %v1019_v38 = vadd.f32 %v2612_v9, %v3541_v23  ;;  %v1110_v16 = vpop.f32.mrf.mxu0  ;;  %v1221_v62 = vadd.f32 %v1220_v55, %v3878_v8  ;;  %v1331_v15 = vadd.f32 %v1330_v11, %v1262_v60  ;;  %v1320_v9 = vadd.f32 %v1319_v21, %v1318_v49 }
 0x161   :  { %v2614_v39 = vpop.f32.mrf.mxu1  ;;  %v1111_v25 = vadd.f32 %v1110_v16, %v1014_v37  ;;  %v1271_v60 = vmul.f32 %v3893_v33, %v3893_v33  ;;  %v1190_v61 = vadd.f32 %v1189_v7, %v3864_v26  ;;  %v1300_v11 = vrot.slane %v1299_v56, 1 }
 0x162   :  { %v2615_v20 = vadd.f32 %v2614_v39, %v2613_v57  ;;  %v1116_v1 = vadd.f32 %v2758_v34, %v1019_v38  ;;  %v1332_v57 = vadd.f32 %v1331_v15, %v1265_v22  ;;  %v1222_v34 = vadd.f32 %v1221_v62, %v3890_v30 }
 0x163   :  { %v3899_v53 = vmax.f32 %v1111_v25, 0.0  ;;  %v1211_v39 = vadd.f32 %v1210_v43, %v1209_v28  ;;  %v1321_v37 = vrot.slane %v1320_v9, 1  ;;  %v1301_v15 = vadd.f32 %v1300_v11, %v1299_v56 }
 0x164   :  { %v1022_v4 = vadd.f32 %v2615_v20, %v3541_v23  ;;  %v3905_v38 = vmax.f32 %v1116_v1, 0.0  ;;  %v1223_v23 = vadd.f32 %v1222_v34, %v3893_v33  ;;  %v1333_v49 = vadd.f32 %v1332_v57, %v1268_v52 }
 0x165   :  { %v1274_v10 = vmul.f32 %v3899_v53, %v3899_v53  ;;  %v1322_v25 = vadd.f32 %v1321_v37, %v1320_v9  ;;  %v1345_v22 = vmul.f32 0.0078125, %v1211_v39  ;;  %v1347_v7 = vmul.f32 0.0078125, %v1301_v15 }
 0x166   :  { %v1119_v27 = vadd.f32 %v2759_v54, %v1022_v4  ;;  %v1334_v16 = vadd.f32 %v1333_v49, %v1271_v60  ;;  %v1224_v54 = vadd.f32 %v1223_v23, %v3899_v53  ;;  %v1277_v55 = vmul.f32 %v3905_v38, %v3905_v38 }
 0x167   :  { %v1344_v4 = vmul.f32 0.0078125, %v1190_v61  ;;  %v1348_v26 = vmul.f32 0.0078125, %v1322_v25  ;;  %v1351_v57 = vmul.f32 %v1345_v22, %v1345_v22 }
 0x168   :  { %v3910_v21 = vmax.f32 %v1119_v27, 0.0  ;;  %v1225_v46 = vadd.f32 %v1224_v54, %v3905_v38  ;;  %v1335_v1 = vadd.f32 %v1334_v16, %v1274_v10 }
 0x169   :  { %v1350_v60 = vmul.f32 %v1344_v4, %v1344_v4  ;;  %v1354_v17 = vsub.f32 %v1348_v26, %v1351_v57 }
 0x16a   :  { %v1280_v20 = vmul.f32 %v3910_v21, %v3910_v21  ;;  %v1226_v28 = vadd.f32 %v1225_v46, %v3910_v21  ;;  %v1336_v62 = vadd.f32 %v1335_v1, %v1277_v55 }
 0x16b   :  { %v1353_v9 = vsub.f32 %v1347_v7, %v1350_v60  ;;  %v1358_v16 = vadd.f32 1e-05, %v1354_v17 }
 0x16c   :  { %v1227_v43 = vrot.slane %v1226_v28, 4  ;;  %v1337_v52 = vadd.f32 %v1336_v62, %v1280_v20  ;;  %v2997_v62 = vmov 1966171168  }
 0x16d   :  { %v1357_v61 = vadd.f32 1e-05, %v1353_v9  ;;  %2986 = vrsqrt.f32 %v1358_v16  ;;  %v1368_v15 = vunpack.c.l.s4 %v2997_v62  ;;  %v4445_v62 = vld [vmem:[#allocation4_spill] sm:$0xff] }
 0x16e   :  { %v1228_v34 = vadd.f32 %v1227_v43, %v1226_v28  ;;  %v1338_v27 = vrot.slane %v1337_v52, 4 }
 0x16f   :  { %2988 = vrsqrt.f32 %v1357_v61  ;;  %v1369_v43 = vunpack.c.0.s8 %v1368_v15 }
 0x170   :  { %v1229_v23 = vrot.slane %v1228_v34, 2  ;;  %v1339_v49 = vadd.f32 %v1338_v27, %v1337_v52 }
 0x171   :  { %v1372_v17 = vsub.s32 %v1369_v43, %v3408_v45  ;;  %v4446_v43 = vld [vmem:[#allocation3_spill] sm:$0xff] }
 0x172   :  { %v1230_v54 = vadd.f32 %v1229_v23, %v1228_v34  ;;  %v1340_v10 = vrot.slane %v1339_v49, 2  ;;  %v1356_v23 = vld [vmem:[%s4399_s3] sm:$0x7] }
 0x174   :  { %v1231_v39 = vrot.slane %v1230_v54, 1  ;;  %v1341_v37 = vadd.f32 %v1340_v10, %v1339_v49 }
 0x176   :  { %v1232_v55 = vadd.f32 %v1231_v39, %v1230_v54  ;;  %v1342_v56 = vrot.slane %v1341_v37, 1 }
 0x178   :  { %v1343_v11 = vadd.f32 %v1342_v56, %v1341_v37  ;;  %v1346_v20 = vmul.f32 0.0078125, %v1232_v55 }
 0x17a   :  { %v1349_v46 = vmul.f32 0.0078125, %v1343_v11  ;;  %v1352_v1 = vmul.f32 %v1346_v20, %v1346_v20  ;;  %v2987_v52 = vpop.eup %2986 }
 0x17c   :  { %v1355_v25 = vsub.f32 %v1349_v46, %v1352_v1  ;;  %v2989_v26 = vpop.eup %2988  ;;  %v1391_v46 = vld [vmem:[%s4400_s4] sm:$0x7] }
 0x17d   :  { %v1366_v57 = vcombine.low %v2989_v26, %v2987_v52  ;;  %v4447_v26 = vld [vmem:[#allocation2_spill] sm:$0xff] }
 0x17e   :  { %v1359_v28 = vadd.f32 1e-05, %v1355_v25 }
 0x17f   :  { %v1373_v27 = vrot.slane %v1366_v57, %v1372_v17 }
 0x180   :  { %2990 = vrsqrt.f32 %v1359_v28 }
 0x18d   :  { %v2991_v34 = vpop.eup %2990 }
 0x18e   :  { %v1380_v7 = vrot.slane %v2991_v34, %v1372_v17  ;;  %v4448_v34 = vld [vmem:[#allocation6_spill] sm:$0xff] }
 0x190   :  { %v1381_v60 = vcombine.low %v1373_v27, %v1380_v7  ;;  %v4449_v7 = vld [vmem:[#allocation8_spill] sm:$0xff] }
 0x192   :  { %v1388_v49 = vrot.slane %v1381_v60, %v1372_v17 }
 0x194   :  { %v1390_v54 = vmul.f32 %v1388_v49, %v1356_v23  ;;  %v4450_v23 = vld [vmem:[#allocation5_spill] sm:$0xff] }
 0x196   :  { %v3927_v10 = vrot.slane %v1390_v54, %v3415_v48  ;;  %v3930_v9 = vrot.slane %v1390_v54, %v3425_v51  ;;  %v3933_v39 = vrot.slane %v1390_v54, %v3491_v32 }
 0x198   :  { %v1408_v45 = vmul.f32 %v3927_v10, %v1344_v4  ;;  %v1409_v37 = vmul.f32 %v3930_v9, %v1345_v22  ;;  %v1410_v16 = vmul.f32 %v3933_v39, %v1346_v20  ;;  %v1480_v25 = vmul.f32 %v3933_v39, %v3899_v53 }
 0x199   :  { %v1440_v28 = vmul.f32 %v3930_v9, %v3529_v14  ;;  %v1443_v22 = vmul.f32 %v3930_v9, %v4445_v62  ;;  %v1441_v20 = vmul.f32 %v3933_v39, %v3810_v36  ;;  %v1444_v15 = vmul.f32 %v3933_v39, %v3822_v31 }
 0x19a   :  { %v1414_v55 = vcombine.low %v1408_v45, %v1409_v37  ;;  %v1428_v61 = vrot.slane %v1410_v16, %v1372_v17  ;;  %v1439_v52 = vmul.f32 %v3927_v10, %v4446_v43  ;;  %v1442_v57 = vmul.f32 %v3927_v10, %v4447_v26  ;;  %v4452_v26 = vld [vmem:[#allocation10_spill] sm:$0xff] }
 0x19b   :  { %v1447_v53 = vmul.f32 %v3933_v39, %v3820_v0  ;;  %v1450_v14 = vmul.f32 %v3933_v39, %v3831_v63  ;;  %v1446_v27 = vmul.f32 %v3930_v9, %v4448_v34  ;;  %v1449_v60 = vmul.f32 %v3930_v9, %v4449_v7 }
 0x19c   :  { %v1421_v56 = vrot.slane %v1414_v55, %v1372_v17  ;;  %v1453_v0 = vmul.f32 %v3933_v39, %v3847_v5  ;;  %v1456_v63 = vmul.f32 %v3933_v39, %v3858_v24  ;;  %v1445_v49 = vmul.f32 %v3927_v10, %v4450_v23 }
 0x19d   :  { %v1468_v34 = vmul.f32 %v3933_v39, %v3880_v35  ;;  %v1486_v23 = vmul.f32 %v3933_v39, %v3910_v21  ;;  %v1471_v21 = vmul.f32 %v3933_v39, %v3878_v8 }
 0x19e   :  { %v1429_v11 = vcombine.low %v1421_v56, %v1428_v61 }
 0x1a0   :  { %v1436_v1 = vrot.slane %v1429_v11, %v1372_v17 }
 0x1a2   :  { %v1438_v4 = vsub.f32 %v1391_v46, %v1436_v1 }
 0x1a4   :  { %v3960_v17 = vrot.slane %v1438_v4, %v3415_v48  ;;  %v3963_v36 = vrot.slane %v1438_v4, %v3425_v51  ;;  %v3966_v31 = vrot.slane %v1438_v4, %v3491_v32 }
 0x1a6   :  { %v1504_v51 = vadd.f32 %v3963_v36, %v1440_v28  ;;  %v1507_v32 = vadd.f32 %v3963_v36, %v1443_v22  ;;  %v1505_v54 = vadd.f32 %v3966_v31, %v1441_v20  ;;  %v1508_v45 = vadd.f32 %v3966_v31, %v1444_v15  ;;  %v4451_v22 = vld [vmem:[#allocation7_spill] sm:$0xff] }
 0x1a7   :  { %v1503_v37 = vadd.f32 %v3960_v17, %v1439_v52  ;;  %v1506_v16 = vadd.f32 %v3960_v17, %v1442_v57  ;;  %v1511_v5 = vadd.f32 %v3966_v31, %v1447_v53  ;;  %v1514_v55 = vadd.f32 %v3966_v31, %v1450_v14 }
 0x1a8   :  { %v1552_v24 = vpack.c.bf16 %v1507_v32, %v1504_v51  ;;  %v1553_v56 = vpack.c.bf16 %v1508_v45, %v1505_v54  ;;  %v1510_v61 = vadd.f32 %v3963_v36, %v1446_v27  ;;  %v1513_v11 = vadd.f32 %v3963_v36, %v1449_v60 }
 0x1a9   :  { %v1551_v46 = vpack.c.bf16 %v1506_v16, %v1503_v37  ;;  %v1556_v1 = vpack.c.bf16 %v1514_v55, %v1511_v5  ;;  %v1517_v28 = vadd.f32 %v3966_v31, %v1453_v0  ;;  %v1520_v4 = vadd.f32 %v3966_v31, %v1456_v63 }
 0x1aa   :  { %1806 = vmatprep.mubr.bf16.mxu0 %v1552_v24  ;;  %2776 = vmatprep.mubr.bf16.mxu1 %v1553_v56  ;;  %v1555_v62 = vpack.c.bf16 %v1513_v11, %v1510_v61  ;;  %v1448_v20 = vmul.f32 %v3927_v10, %v4451_v22  ;;  %v1459_v15 = vmul.f32 %v3933_v39, %v3856_v29 }
 0x1ab   :  { %1807 = vmatmul.mubr.bf16.vlgmr.msra.gmra.mxu0 %v1551_v46  ;;  %2777 = vmatmul.mubr.bf16.vlgmr.msra.gmra.mxu1 %v1556_v1  ;;  %v1559_v43 = vpack.c.bf16 %v1520_v4, %v1517_v28  ;;  %v1462_v52 = vmul.f32 %v3933_v39, %v3860_v3  ;;  %v1452_v57 = vmul.f32 %v3930_v9, %v4452_v26 }
 0x1ac   :  { %1814 = vmatprep.mubr.bf16.mxu0 %v1555_v62  ;;  %v1455_v53 = vmul.f32 %v3930_v9, %v3620_v44  ;;  %v1465_v14 = vmul.f32 %v3933_v39, %v3872_v2  ;;  %v1477_v29 = vmul.f32 %v3933_v39, %v3893_v33  ;;  %v1509_v27 = vadd.f32 %v3960_v17, %v1445_v49  ;;  %v4453_v49 = vld [vmem:[#allocation9_spill] sm:$0xff] }
 0x1ad   :  { %2780 = vmatprep.mubr.bf16.mxu1 %v1559_v43  ;;  %v1512_v3 = vadd.f32 %v3960_v17, %v1448_v20  ;;  %v1523_v7 = vadd.f32 %v3966_v31, %v1459_v15  ;;  %v1526_v60 = vadd.f32 %v3966_v31, %v1462_v52  ;;  %v1516_v44 = vadd.f32 %v3963_v36, %v1452_v57 }
 0x1ae   :  { %v1519_v0 = vadd.f32 %v3963_v36, %v1455_v53  ;;  %v1529_v2 = vadd.f32 %v3966_v31, %v1465_v14  ;;  %v1532_v35 = vadd.f32 %v3966_v31, %v1468_v34  ;;  %v1541_v63 = vadd.f32 %v3966_v31, %v1477_v29 }
 0x1af   :  { %v1483_v33 = vmul.f32 %v3933_v39, %v3905_v38  ;;  %v1451_v51 = vmul.f32 %v3927_v10, %v4453_v49  ;;  %v1544_v32 = vadd.f32 %v3966_v31, %v1480_v25  ;;  %v1554_v54 = vpack.c.bf16 %v1512_v3, %v1509_v27  ;;  %v4454_v3 = vld [vmem:[#allocation11_spill] sm:$0xff] }
 0x1b0   :  { %v1562_v45 = vpack.c.bf16 %v1526_v60, %v1523_v7  ;;  %v1550_v16 = vadd.f32 %v3966_v31, %v1486_v23  ;;  %v1558_v5 = vpack.c.bf16 %v1519_v0, %v1516_v44  ;;  %v1565_v55 = vpack.c.bf16 %v1532_v35, %v1529_v2  ;;  %v4455_v7 = vld [vmem:[#allocation14_spill] sm:$0xff]  ;;  %v4456_v60 = vld [vmem:[#allocation17_spill] sm:$0xff]  ;;  %v4457_v23 = vld [vmem:[#allocation12_spill] sm:$0xff] }
 0x1b1   :  { %v1547_v37 = vadd.f32 %v3966_v31, %v1483_v33  ;;  %v1454_v24 = vmul.f32 %v3927_v10, %v3608_v41  ;;  %v1571_v38 = vpack.c.bf16 %v1544_v32, %v1541_v63  ;;  %v1474_v25 = vmul.f32 %v3933_v39, %v3890_v30 }
 0x1b2   :  { %v1458_v61 = vmul.f32 %v3930_v9, %v3647_v47  ;;  %v1461_v11 = vmul.f32 %v3930_v9, %v3672_v13  ;;  %v1515_v41 = vadd.f32 %v3960_v17, %v1451_v51  ;;  %v1535_v1 = vadd.f32 %v3966_v31, %v1471_v21  ;;  %v4458_v51 = vld [vmem:[#allocation13_spill] sm:$0xff] }
 0x1b3   :  { %1815 = vmatmul.mubr.bf16.gmra.mxu0 %v1554_v54  ;;  %2781 = vmatmul.mubr.bf16.gmra.mxu1 %v1562_v45  ;;  %v1574_v56 = vpack.c.bf16 %v1550_v16, %v1547_v37  ;;  %v1518_v46 = vadd.f32 %v3960_v17, %v1454_v24  ;;  %v1538_v8 = vadd.f32 %v3966_v31, %v1474_v25  ;;  %v4459_v54 = vld [vmem:[#allocation18_spill] sm:$0xff]  ;;  %v4460_v37 = vld [vmem:[#allocation19_spill] sm:$0xff] }
 0x1b4   :  { %1822 = vmatprep.mubr.bf16.mxu0 %v1558_v5  ;;  %2784 = vmatprep.mubr.bf16.mxu1 %v1565_v55  ;;  %v1522_v28 = vadd.f32 %v3963_v36, %v1458_v61  ;;  %v1525_v30 = vadd.f32 %v3963_v36, %v1461_v11  ;;  %v1457_v13 = vmul.f32 %v3927_v10, %v3633_v40  ;;  %v4462_v11 = vld [vmem:[#allocation16_spill] sm:$0xff] }
 0x1b5   :  { %v1557_v39 = vpack.c.bf16 %v1518_v46, %v1515_v41  ;;  %v1568_v4 = vpack.c.bf16 %v1538_v8, %v1535_v1  ;;  %v1460_v47 = vmul.f32 %v3927_v10, %v3651_v50  ;;  %v1464_v31 = vmul.f32 %v3930_v9, %v3684_v59  ;;  %v2979_v8 = vld [vmem:[%s4401_s9 + $0x30] sm:$0xff]  }
 0x1b6   :  { %v1561_v62 = vpack.c.bf16 %v1525_v30, %v1522_v28  ;;  %v1467_v22 = vmul.f32 %v3930_v9, %v3708_v58  ;;  %v1521_v20 = vadd.f32 %v3960_v17, %v1457_v13  ;;  %v1463_v50 = vmul.f32 %v3927_v10, %v3681_v19  ;;  %v2982_v28 = vld [vmem:[%s4401_s9 + $0x18] sm:$0xff]   ;;  %v2983_v13 = vld [vmem:[%s4401_s9 + $0x10] sm:$0xff]  }
 0x1b7   :  { %v1524_v15 = vadd.f32 %v3960_v17, %v1460_v47  ;;  %v1528_v43 = vadd.f32 %v3963_v36, %v1464_v31  ;;  %v1466_v59 = vmul.f32 %v3927_v10, %v3696_v42  ;;  %v1470_v58 = vmul.f32 %v3930_v9, %v3741_v12 }
 0x1b8   :  { %v1531_v52 = vadd.f32 %v3963_v36, %v1467_v22  ;;  %v1473_v57 = vmul.f32 %v3930_v9, %v3751_v6  ;;  %v1527_v53 = vadd.f32 %v3960_v17, %v1463_v50  ;;  %v1469_v42 = vmul.f32 %v3927_v10, %v3723_v18 }
 0x1b9   :  { %v1560_v40 = vpack.c.bf16 %v1524_v15, %v1521_v20  ;;  %v1530_v14 = vadd.f32 %v3960_v17, %v1466_v59  ;;  %v1534_v34 = vadd.f32 %v3963_v36, %v1470_v58  ;;  %v1472_v12 = vmul.f32 %v3927_v10, %v4454_v3  ;;  %v2984_v20 = vld [vmem:[%s4401_s9 + $0x8] sm:$0xff]  }
 0x1ba   :  { %v1564_v26 = vpack.c.bf16 %v1531_v52, %v1528_v43  ;;  %v1537_v29 = vadd.f32 %v3963_v36, %v1473_v57  ;;  %v1476_v6 = vmul.f32 %v3930_v9, %v4455_v7  ;;  %v1479_v44 = vmul.f32 %v3930_v9, %v4456_v60 }
 0x1bb   :  { %1823 = vmatmul.mubr.bf16.gmra.mxu0 %v1557_v39  ;;  %2785 = vmatmul.mubr.bf16.gmra.mxu1 %v1568_v4  ;;  %v1563_v27 = vpack.c.bf16 %v1530_v14, %v1527_v53  ;;  %v1533_v0 = vadd.f32 %v3960_v17, %v1469_v42  ;;  %v1536_v2 = vadd.f32 %v3960_v17, %v1472_v12  ;;  %v4121_v12 = vld [vmem:[%s4402_s6] ss:$0 sm:$0xff] }
 0x1bc   :  { %1830 = vmatprep.mubr.bf16.mxu0 %v1561_v62  ;;  %2788 = vmatprep.mubr.bf16.mxu1 %v1571_v38  ;;  %v1567_v19 = vpack.c.bf16 %v1537_v29, %v1534_v34  ;;  %v1540_v35 = vadd.f32 %v3963_v36, %v1476_v6  ;;  %v1543_v63 = vadd.f32 %v3963_v36, %v1479_v44 }
 0x1bd   :  { %v1566_v33 = vpack.c.bf16 %v1536_v2, %v1533_v0  ;;  %v1475_v49 = vmul.f32 %v3927_v10, %v4457_v23  ;;  %v1478_v32 = vmul.f32 %v3927_v10, %v4458_v51  ;;  %v1482_v45 = vmul.f32 %v3930_v9, %v4459_v54 }
 0x1be   :  { %v1570_v18 = vpack.c.bf16 %v1543_v63, %v1540_v35  ;;  %v1485_v16 = vmul.f32 %v3930_v9, %v4460_v37  ;;  %v1484_v41 = vmul.f32 %v3927_v10, %v4462_v11 }
 0x1bf   :  { %v1539_v5 = vadd.f32 %v3960_v17, %v1475_v49  ;;  %v1542_v55 = vadd.f32 %v3960_v17, %v1478_v32  ;;  %v1546_v24 = vadd.f32 %v3963_v36, %v1482_v45 }
 0x1c0   :  { %v1549_v38 = vadd.f32 %v3963_v36, %v1485_v16  ;;  %v1548_v46 = vadd.f32 %v3960_v17, %v1484_v41  ;;  %v2978_v36 = vld [vmem:[%s4401_s9 + $0x38] sm:$0xff]  }
 0x1c1   :  { %v1569_v21 = vpack.c.bf16 %v1542_v55, %v1539_v5  ;;  %2792 = vmatprep.subr.bf16.mxu1 %v2978_v36 }
 0x1c2   :  { %v1573_v25 = vpack.c.bf16 %v1549_v38, %v1546_v24  ;;  %2793 = vmatpush3.bf16.msra.mxu1 %v2978_v36 }
 0x1c3   :  { %1831 = vmatmul.mubr.bf16.gmra.mxu0 %v1560_v40  ;;  %2789 = vmatmul.mubr.bf16.gmra.mxu1 %v1574_v56  ;;  %v4461_v56 = vld [vmem:[#allocation15_spill] sm:$0xff]  ;;  %v2985_v40 = vld [vmem:[%s4401_s9] sm:$0xff]  }
 0x1c4   :  { %1838 = vmatprep.mubr.bf16.mxu0 %v1564_v26  ;;  %v1481_v61 = vmul.f32 %v3927_v10, %v4461_v56  ;;  %2794 = vmatprep.subr.bf16.mxu1 %v2979_v8  ;;  %v2980_v10 = vld [vmem:[%s4401_s9 + $0x28] sm:$0xff]  }
 0x1c6   :  { %v1545_v9 = vadd.f32 %v3960_v17, %v1481_v61  ;;  %2795 = vmatpush3.bf16.msra.mxu1 %v2979_v8  ;;  %v2981_v17 = vld [vmem:[%s4401_s9 + $0x20] sm:$0xff]  }
 0x1c7   :  { %2796 = vmatprep.subr.bf16.mxu1 %v2980_v10 }
 0x1c8   :  { %v1572_v1 = vpack.c.bf16 %v1548_v46, %v1545_v9 }
 0x1ca   :  { %2797 = vmatpush3.bf16.msra.mxu1 %v2980_v10 }
 0x1cb   :  { %1839 = vmatmul.mubr.bf16.gmra.mxu0 %v1563_v27  ;;  %2798 = vmatprep.subr.bf16.mxu1 %v2981_v17 }
 0x1cc   :  { %1846 = vmatprep.mubr.bf16.mxu0 %v1567_v19 }
 0x1ce   :  { %2799 = vmatpush3.bf16.msra.mxu1 %v2981_v17 }
 0x1cf   :  { %2800 = vmatprep.subr.bf16.mxu1 %v2982_v28 }
 0x1d2   :  { %2801 = vmatpush3.bf16.msra.mxu1 %v2982_v28 }
 0x1d3   :  { %1847 = vmatmul.mubr.bf16.gmra.mxu0 %v1566_v33  ;;  %2802 = vmatprep.subr.bf16.mxu1 %v2983_v13 }
 0x1d4   :  { %1854 = vmatprep.mubr.bf16.mxu0 %v1570_v18 }
 0x1d6   :  { %2803 = vmatpush3.bf16.msra.mxu1 %v2983_v13 }
 0x1d7   :  { %2804 = vmatprep.subr.bf16.mxu1 %v2984_v20 }
 0x1da   :  { %2805 = vmatpush3.bf16.msra.mxu1 %v2984_v20 }
 0x1db   :  { %1855 = vmatmul.mubr.bf16.gmra.mxu0 %v1569_v21  ;;  %2806 = vmatprep.subr.bf16.mxu1 %v2985_v40 }
 0x1dc   :  { %1862 = vmatprep.mubr.bf16.mxu0 %v1573_v25 }
 0x1de   :  { %2807 = vmatpush3.bf16.msra.mxu1 %v2985_v40 }
 0x1e3   :  { %1863 = vmatmul.mubr.bf16.gmra.mxu0 %v1572_v1 }
 0x26b   :  { %v2648_v30 = vpop.f32.mrf.mxu0  ;;  %v2778_v39 = vpop.f32.mrf.mxu1 }
 0x26d   :  { %v2649_v4 = vpop.f32.mrf.mxu0  ;;  %v1905_v62 = vpop.f32.mrf.mxu1 }
 0x26e   :  { %v2650_v42 = vadd.f32 %v2649_v4, %v2648_v30 }
 0x26f   :  { %v2651_v47 = vpop.f32.mrf.mxu0  ;;  %v2779_v31 = vpop.f32.mrf.mxu1 }
 0x270   :  { %v1809_v2 = vadd.f32 %v2650_v42, %v4121_v12 }
 0x271   :  { %v2652_v22 = vpop.f32.mrf.mxu0  ;;  %v1908_v43 = vpop.f32.mrf.mxu1 }
 0x272   :  { %v2653_v27 = vadd.f32 %v2652_v22, %v2651_v47  ;;  %v1906_v54 = vadd.f32 %v1905_v62, %v1809_v2 }
 0x273   :  { %v2654_v15 = vpop.f32.mrf.mxu0  ;;  %v2782_v50 = vpop.f32.mrf.mxu1 }
 0x274   :  { %v1812_v60 = vadd.f32 %v2653_v27, %v4121_v12  ;;  %v4133_v61 = vmax.f32 %v1906_v54, 0.0 }
 0x275   :  { %v2655_v52 = vpop.f32.mrf.mxu0  ;;  %v1921_v57 = vpop.f32.mrf.mxu1 }
 0x276   :  { %v2656_v3 = vadd.f32 %v2655_v52, %v2654_v15  ;;  %v1909_v23 = vadd.f32 %v1908_v43, %v1812_v60  ;;  %v2005_v4 = vmul.f32 %v4133_v61, %v4133_v61 }
 0x277   :  { %v2657_v26 = vpop.f32.mrf.mxu0  ;;  %v2783_v34 = vpop.f32.mrf.mxu1 }
 0x278   :  { %v1817_v35 = vadd.f32 %v2656_v3, %v4121_v12  ;;  %v4130_v24 = vmax.f32 %v1909_v23, 0.0 }
 0x279   :  { %v2658_v59 = vpop.f32.mrf.mxu0  ;;  %v1924_v7 = vpop.f32.mrf.mxu1 }
 0x27a   :  { %v2659_v44 = vadd.f32 %v2658_v59, %v2657_v26  ;;  %v1914_v45 = vadd.f32 %v2778_v39, %v1817_v35  ;;  %v2006_v8 = vmul.f32 %v4130_v24, %v4130_v24  ;;  %v1984_v15 = vadd.f32 %v4130_v24, %v4133_v61 }
 0x27b   :  { %v2660_v58 = vpop.f32.mrf.mxu0  ;;  %v4126_v63 = vpop.f32.mrf.mxu1 }
 0x27c   :  { %v1820_v49 = vadd.f32 %v2659_v44, %v4121_v12  ;;  %v4135_v11 = vmax.f32 %v1914_v45, 0.0  ;;  %v2021_v43 = vadd.f32 %v2006_v8, %v2005_v4 }
 0x27d   :  { %v2661_v53 = vpop.f32.mrf.mxu0  ;;  %v1937_v16 = vpop.f32.mrf.mxu1 }
 0x27e   :  { %v2662_v33 = vadd.f32 %v2661_v53, %v2660_v58  ;;  %v1917_v38 = vadd.f32 %v2779_v31, %v1820_v49  ;;  %v2007_v62 = vmul.f32 %v4135_v11, %v4135_v11  ;;  %v1985_v53 = vadd.f32 %v1984_v15, %v4135_v11 }
 0x27f   :  { %v2663_v14 = vpop.f32.mrf.mxu0  ;;  %v2787_v9 = vpop.f32.mrf.mxu1 }
 0x280   :  { %v1825_v37 = vadd.f32 %v2662_v33, %v4121_v12  ;;  %v4140_v10 = vmax.f32 %v1917_v38, 0.0 }
 0x281   :  { %v2664_v29 = vpop.f32.mrf.mxu0  ;;  %v1940_v47 = vpop.f32.mrf.mxu1 }
 0x282   :  { %v2665_v51 = vadd.f32 %v2664_v29, %v2663_v14  ;;  %v1922_v41 = vadd.f32 %v1921_v57, %v1825_v37  ;;  %v2008_v40 = vmul.f32 %v4140_v10, %v4140_v10 }
 0x283   :  { %v2666_v19 = vpop.f32.mrf.mxu0  ;;  %v2790_v29 = vpop.f32.mrf.mxu1 }
 0x284   :  { %v1828_v21 = vadd.f32 %v2665_v51, %v4121_v12  ;;  %v4147_v13 = vmax.f32 %v1922_v41, 0.0 }
 0x285   :  { %v2667_v6 = vpop.f32.mrf.mxu0  ;;  %v1953_v49 = vpop.f32.mrf.mxu1 }
 0x286   :  { %v2668_v5 = vadd.f32 %v2667_v6, %v2666_v19  ;;  %v1925_v17 = vadd.f32 %v1924_v7, %v1828_v21  ;;  %v2009_v14 = vmul.f32 %v4147_v13, %v4147_v13  ;;  %v1986_v7 = vadd.f32 %v1985_v53, %v4140_v10 }
 0x287   :  { %v2669_v0 = vpop.f32.mrf.mxu0 }
 0x288   :  { %v1833_v46 = vadd.f32 %v2668_v5, %v4121_v12  ;;  %v4154_v26 = vmax.f32 %v1925_v17, 0.0  ;;  %v1987_v35 = vadd.f32 %v1986_v7, %v4147_v13 }
 0x289   :  { %v2670_v18 = vpop.f32.mrf.mxu0 }
 0x28a   :  { %v2671_v25 = vadd.f32 %v2670_v18, %v2669_v0  ;;  %v1930_v31 = vadd.f32 %v2782_v50, %v1833_v46  ;;  %v2022_v50 = vadd.f32 %v2021_v43, %v2007_v62  ;;  %v2010_v60 = vmul.f32 %v4154_v26, %v4154_v26  ;;  %v2791_v46 = vpop.f32.mrf.mxu1 }
 0x28b   :  { %v2672_v32 = vpop.f32.mrf.mxu0  ;;  %v1988_v45 = vadd.f32 %v1987_v35, %v4154_v26 }
 0x28c   :  { %v1836_v28 = vadd.f32 %v2671_v25, %v4121_v12  ;;  %v4160_v27 = vmax.f32 %v1930_v31, 0.0  ;;  %v1956_v31 = vpop.f32.mrf.mxu1 }
 0x28d   :  { %v2673_v55 = vpop.f32.mrf.mxu0 }
 0x28e   :  { %v2674_v1 = vadd.f32 %v2673_v55, %v2672_v32  ;;  %v1933_v59 = vadd.f32 %v2783_v34, %v1836_v28  ;;  %v2023_v34 = vadd.f32 %v2022_v50, %v2008_v40  ;;  %v2011_v23 = vmul.f32 %v4160_v27, %v4160_v27 }
 0x28f   :  { %v2675_v56 = vpop.f32.mrf.mxu0  ;;  %v1989_v25 = vadd.f32 %v1988_v45, %v4160_v27 }
 0x290   :  { %v1841_v22 = vadd.f32 %v2674_v1, %v4121_v12  ;;  %v4166_v44 = vmax.f32 %v1933_v59, 0.0  ;;  %v2024_v18 = vadd.f32 %v2023_v34, %v2009_v14 }
 0x291   :  { %v2676_v36 = vpop.f32.mrf.mxu0 }
 0x292   :  { %v2677_v30 = vadd.f32 %v2676_v36, %v2675_v56  ;;  %v1938_v19 = vadd.f32 %v1937_v16, %v1841_v22  ;;  %v2025_v16 = vadd.f32 %v2024_v18, %v2010_v60  ;;  %v2012_v5 = vmul.f32 %v4166_v44, %v4166_v44 }
 0x293   :  { %v2678_v39 = vpop.f32.mrf.mxu0  ;;  %v1990_v8 = vadd.f32 %v1989_v25, %v4166_v44 }
 0x294   :  { %v1844_v58 = vadd.f32 %v2677_v30, %v4121_v12  ;;  %v4172_v51 = vmax.f32 %v1938_v19, 0.0  ;;  %v2026_v41 = vadd.f32 %v2025_v16, %v2011_v23 }
 0x295   :  { %v2679_v20 = vpop.f32.mrf.mxu0 }
 0x296   :  { %v2680_v52 = vadd.f32 %v2679_v20, %v2678_v39  ;;  %v1941_v0 = vadd.f32 %v1940_v47, %v1844_v58  ;;  %v2027_v30 = vadd.f32 %v2026_v41, %v2012_v5  ;;  %v1991_v62 = vadd.f32 %v1990_v8, %v4172_v51 }
 0x297   :  { %v2681_v57 = vpop.f32.mrf.mxu0 }
 0x298   :  { %v1849_v42 = vadd.f32 %v2680_v52, %v4121_v12  ;;  %v4178_v55 = vmax.f32 %v1941_v0, 0.0 }
 0x299   :  { %v2682_v3 = vpop.f32.mrf.mxu0 }
 0x29a   :  { %v2683_v6 = vadd.f32 %v2682_v3, %v2681_v57  ;;  %v1946_v32 = vadd.f32 %v4126_v63, %v1849_v42  ;;  %v2013_v63 = vmul.f32 %v4172_v51, %v4172_v51  ;;  %v1992_v43 = vadd.f32 %v1991_v62, %v4178_v55 }
 0x29b   :  { %v2684_v2 = vpop.f32.mrf.mxu0 }
 0x29c   :  { %v1852_v33 = vadd.f32 %v2683_v6, %v4121_v12  ;;  %v4184_v1 = vmax.f32 %v1946_v32, 0.0  ;;  %v2028_v22 = vadd.f32 %v2027_v30, %v2013_v63 }
 0x29d   :  { %v2685_v54 = vpop.f32.mrf.mxu0 }
 0x29e   :  { %v2686_v37 = vadd.f32 %v2685_v54, %v2684_v2  ;;  %v1949_v38 = vadd.f32 %v2787_v9, %v1852_v33  ;;  %v2014_v9 = vmul.f32 %v4178_v55, %v4178_v55  ;;  %v2015_v20 = vmul.f32 %v4184_v1, %v4184_v1 }
 0x29f   :  { %v2687_v21 = vpop.f32.mrf.mxu0  ;;  %v1993_v50 = vadd.f32 %v1992_v43, %v4184_v1 }
 0x2a0   :  { %v1857_v56 = vadd.f32 %v2686_v37, %v4121_v12  ;;  %v4189_v39 = vmax.f32 %v1949_v38, 0.0  ;;  %v2029_v58 = vadd.f32 %v2028_v22, %v2014_v9 }
 0x2a1   :  { %v2688_v36 = vpop.f32.mrf.mxu0 }
 0x2a2   :  { %v1954_v17 = vadd.f32 %v1953_v49, %v1857_v56  ;;  %v2689_v28 = vadd.f32 %v2688_v36, %v2687_v21  ;;  %v2016_v57 = vmul.f32 %v4189_v39, %v4189_v39  ;;  %v2030_v42 = vadd.f32 %v2029_v58, %v2015_v20  ;;  %v2046_v20 = vld [vmem:[%s4403_s7] sm:$0x1] }
 0x2a3   :  { %v2690_v4 = vpop.f32.mrf.mxu0  ;;  %v1994_v7 = vadd.f32 %v1993_v50, %v4189_v39 }
 0x2a4   :  { %v1860_v47 = vadd.f32 %v2689_v28, %v4121_v12  ;;  %v4196_v52 = vmax.f32 %v1954_v17, 0.0  ;;  %v2031_v0 = vadd.f32 %v2030_v42, %v2016_v57 }
 0x2a5   :  { %v2691_v15 = vpop.f32.mrf.mxu0 }
 0x2a6   :  { %v1957_v40 = vadd.f32 %v1956_v31, %v1860_v47  ;;  %v2692_v59 = vadd.f32 %v2691_v15, %v2690_v4  ;;  %v2017_v6 = vmul.f32 %v4196_v52, %v4196_v52  ;;  %v1995_v2 = vadd.f32 %v1994_v7, %v4196_v52 }
 0x2a7   :  { %v2693_v53 = vpop.f32.mrf.mxu0 }
 0x2a8   :  { %v4201_v14 = vmax.f32 %v1957_v40, 0.0  ;;  %v1865_v19 = vadd.f32 %v2692_v59, %v4121_v12  ;;  %v2032_v23 = vadd.f32 %v2031_v0, %v2017_v6  ;;  %v2050_v40 = vld [vmem:[%s4404_s8] sm:$0x1] }
 0x2a9   :  { %v2694_v3 = vpop.f32.mrf.mxu0 }
 0x2aa   :  { %v1962_v34 = vadd.f32 %v2790_v29, %v1865_v19  ;;  %v2695_v60 = vadd.f32 %v2694_v3, %v2693_v53  ;;  %v2018_v35 = vmul.f32 %v4201_v14, %v4201_v14  ;;  %v1996_v49 = vadd.f32 %v1995_v2, %v4201_v14 }
 0x2ac   :  { %v4210_v33 = vmax.f32 %v1962_v34, 0.0  ;;  %v1868_v18 = vadd.f32 %v2695_v60, %v4121_v12  ;;  %v2033_v45 = vadd.f32 %v2032_v23, %v2018_v35 }
 0x2ae   :  { %v2019_v32 = vmul.f32 %v4210_v33, %v4210_v33  ;;  %v1965_v54 = vadd.f32 %v2791_v46, %v1868_v18  ;;  %v1997_v29 = vadd.f32 %v1996_v49, %v4210_v33 }
 0x2b0   :  { %v1983_v37 = vmax.f32 %v1965_v54, 0.0  ;;  %v2034_v16 = vadd.f32 %v2033_v45, %v2019_v32 }
 0x2b2   :  { %v1998_v5 = vadd.f32 %v1997_v29, %v1983_v37  ;;  %v2020_v38 = vmul.f32 %v1983_v37, %v1983_v37 }
 0x2b4   :  { %v1999_v21 = vrot.slane %v1998_v5, 4  ;;  %v2035_v25 = vadd.f32 %v2034_v16, %v2020_v38 }
 0x2b6   :  { %v2000_v56 = vadd.f32 %v1999_v21, %v1998_v5  ;;  %v2036_v41 = vrot.slane %v2035_v25, 4 }
 0x2b8   :  { %v2001_v63 = vrot.slane %v2000_v56, 2  ;;  %v2037_v12 = vadd.f32 %v2036_v41, %v2035_v25 }
 0x2ba   :  { %v2002_v36 = vadd.f32 %v2001_v63, %v2000_v56  ;;  %v2038_v8 = vrot.slane %v2037_v12, 2 }
 0x2bc   :  { %v2003_v17 = vrot.slane %v2002_v36, 1  ;;  %v2039_v28 = vadd.f32 %v2038_v8, %v2037_v12 }
 0x2be   :  { %v2004_v30 = vadd.f32 %v2003_v17, %v2002_v36  ;;  %v2040_v9 = vrot.slane %v2039_v28, 1 }
 0x2c0   :  { %v2041_v46 = vadd.f32 %v2040_v9, %v2039_v28  ;;  %v2042_v4 = vmul.f32 0.0078125, %v2004_v30 }
 0x2c2   :  { %v2043_v62 = vmul.f32 0.0078125, %v2041_v46  ;;  %v2044_v47 = vmul.f32 %v2042_v4, %v2042_v4 }
 0x2c4   :  { %v2045_v31 = vsub.f32 %v2043_v62, %v2044_v47 }
 0x2c6   :  { %v2047_v22 = vadd.f32 1e-05, %v2045_v31 }
 0x2c8   :  { %2992 = vrsqrt.f32 %v2047_v22 }
 0x2d5   :  { %v2993_v15 = vpop.eup %2992 }
 0x2d6   :  { %v2049_v43 = vmul.f32 %v2993_v15, %v2046_v20 }
 0x2d8   :  { %v2051_v59 = vmul.f32 %v2049_v43, %v2042_v4  ;;  %v2057_v58 = vrot.slane %v2049_v43, %v3415_v48 }
 0x2da   :  { %v2052_v57 = vsub.f32 %v2050_v40, %v2051_v59  ;;  %v2059_v53 = vmul.f32 %v2057_v58, %v4133_v61  ;;  %v2060_v19 = vmul.f32 %v2057_v58, %v4130_v24  ;;  %v2061_v42 = vmul.f32 %v2057_v58, %v4135_v11 }
 0x2db   :  { %v2062_v3 = vmul.f32 %v2057_v58, %v4140_v10  ;;  %v2063_v7 = vmul.f32 %v2057_v58, %v4147_v13  ;;  %v2064_v6 = vmul.f32 %v2057_v58, %v4154_v26  ;;  %v2069_v61 = vmul.f32 %v2057_v58, %v4184_v1 }
 0x2dc   :  { %v2079_v50 = vrot.slane %v2052_v57, %v3415_v48  ;;  %v2070_v23 = vmul.f32 %v2057_v58, %v4189_v39  ;;  %v2071_v11 = vmul.f32 %v2057_v58, %v4196_v52  ;;  %v2072_v10 = vmul.f32 %v2057_v58, %v4201_v14 }
 0x2dd   :  { %v2073_v29 = vmul.f32 %v2057_v58, %v4210_v33  ;;  %v2065_v16 = vmul.f32 %v2057_v58, %v4160_v27  ;;  %v2066_v1 = vmul.f32 %v2057_v58, %v4166_v44  ;;  %v2074_v5 = vmul.f32 %v2057_v58, %v1983_v37  ;;  %v4243_v44 = vld [vmem:[%s4405_s10] ss:$0 sm:$0xff] }
 0x2de   :  { %v2081_v34 = vadd.f32 %v2079_v50, %v2059_v53  ;;  %v2082_v60 = vadd.f32 %v2079_v50, %v2060_v19  ;;  %v2083_v0 = vadd.f32 %v2079_v50, %v2061_v42  ;;  %v2084_v2 = vadd.f32 %v2079_v50, %v2062_v3 }
 0x2df   :  { %v2085_v35 = vadd.f32 %v2079_v50, %v2063_v7  ;;  %v2086_v18 = vadd.f32 %v2079_v50, %v2064_v6  ;;  %v2091_v32 = vadd.f32 %v2079_v50, %v2069_v61  ;;  %v2092_v13 = vadd.f32 %v2079_v50, %v2070_v23 }
 0x2e0   :  { %v2097_v49 = vpack.c.bf16 %v2082_v60, %v2081_v34  ;;  %v2098_v24 = vpack.c.bf16 %v2084_v2, %v2083_v0  ;;  %v2093_v54 = vadd.f32 %v2079_v50, %v2071_v11  ;;  %v2094_v45 = vadd.f32 %v2079_v50, %v2072_v10 }
 0x2e1   :  { %v2099_v26 = vpack.c.bf16 %v2086_v18, %v2085_v35  ;;  %v2102_v39 = vpack.c.bf16 %v2092_v13, %v2091_v32  ;;  %v2067_v52 = vmul.f32 %v2057_v58, %v4172_v51  ;;  %v2068_v14 = vmul.f32 %v2057_v58, %v4178_v55 }
 0x2e2   :  { %2808 = vmatprep.mubr.bf16.mxu1 %v2097_v49  ;;  %v2103_v38 = vpack.c.bf16 %v2094_v45, %v2093_v54  ;;  %v2095_v21 = vadd.f32 %v2079_v50, %v2073_v29  ;;  %v2087_v25 = vadd.f32 %v2079_v50, %v2065_v16  ;;  %v2088_v56 = vadd.f32 %v2079_v50, %v2066_v1 }
 0x2e3   :  { %2809 = vmatmul.mubr.bf16.vlgmr.msra.gmra.mxu1 %v2098_v24  ;;  %v2096_v41 = vadd.f32 %v2079_v50, %v2074_v5  ;;  %v2089_v63 = vadd.f32 %v2079_v50, %v2067_v52  ;;  %v2090_v12 = vadd.f32 %v2079_v50, %v2068_v14 }
 0x2e4   :  { %2812 = vmatprep.mubr.bf16.mxu1 %v2099_v26  ;;  %v2100_v36 = vpack.c.bf16 %v2088_v56, %v2087_v25 }
 0x2e5   :  { %v2104_v33 = vpack.c.bf16 %v2096_v41, %v2095_v21  ;;  %v2101_v8 = vpack.c.bf16 %v2090_v12, %v2089_v63 }
 0x2eb   :  { %2813 = vmatmul.mubr.bf16.gmra.mxu1 %v2100_v36 }
 0x2ec   :  { %2816 = vmatprep.mubr.bf16.mxu1 %v2101_v8 }
 0x2f3   :  { %2817 = vmatmul.mubr.bf16.gmra.mxu1 %v2102_v39 }
 0x2f4   :  { %2820 = vmatprep.mubr.bf16.mxu1 %v2103_v38 }
 0x2fb   :  { %2821 = vmatmul.mubr.bf16.gmra.mxu1 %v2104_v33 }
 0x3a3   :  { %v2810_v27 = vpop.f32.mrf.mxu1 }
 0x3a4   :  { %v2219_v17 = vadd.f32 %v2810_v27, %v4243_v44 }
 0x3a5   :  { %v2210_v51 = vpop.f32.mrf.mxu1 }
 0x3a6   :  { %v2211_v55 = vadd.f32 %v4243_v44, %v2210_v51  ;;  %v4251_v62 = vmax.f32 %v2219_v17, 0.0 }
 0x3a7   :  { %v2811_v37 = vpop.f32.mrf.mxu1 }
 0x3a8   :  { %v2222_v28 = vadd.f32 %v2811_v37, %v4243_v44  ;;  %v4248_v9 = vmax.f32 %v2211_v55, 0.0  ;;  %v2312_v57 = vmul.f32 %v4251_v62, %v4251_v62 }
 0x3a9   :  { %v2213_v30 = vpop.f32.mrf.mxu1 }
 0x3aa   :  { %v2214_v46 = vadd.f32 %v4243_v44, %v2213_v30  ;;  %v4255_v31 = vmax.f32 %v2222_v28, 0.0  ;;  %v2310_v20 = vmul.f32 %v4248_v9, %v4248_v9 }
 0x3ab   :  { %v2814_v4 = vpop.f32.mrf.mxu1 }
 0x3ac   :  { %v4253_v47 = vmax.f32 %v2214_v46, 0.0  ;;  %v2235_v59 = vadd.f32 %v2814_v4, %v4243_v44  ;;  %v2313_v42 = vmul.f32 %v4255_v31, %v4255_v31 }
 0x3ad   :  { %v2226_v22 = vpop.f32.mrf.mxu1 }
 0x3ae   :  { %v2289_v15 = vadd.f32 %v4253_v47, %v4248_v9  ;;  %v2311_v43 = vmul.f32 %v4253_v47, %v4253_v47  ;;  %v2227_v40 = vadd.f32 %v4243_v44, %v2226_v22  ;;  %v4275_v0 = vmax.f32 %v2235_v59, 0.0 }
 0x3af   :  { %v2815_v58 = vpop.f32.mrf.mxu1 }
 0x3b0   :  { %v2290_v53 = vadd.f32 %v2289_v15, %v4251_v62  ;;  %v2326_v50 = vadd.f32 %v2311_v43, %v2310_v20  ;;  %v4268_v19 = vmax.f32 %v2227_v40, 0.0  ;;  %v2238_v34 = vadd.f32 %v2815_v58, %v4243_v44 }
 0x3b1   :  { %v2229_v3 = vpop.f32.mrf.mxu1  ;;  %v2316_v45 = vmul.f32 %v4275_v0, %v4275_v0 }
 0x3b2   :  { %v2327_v7 = vadd.f32 %v2326_v50, %v2312_v57  ;;  %v2291_v6 = vadd.f32 %v2290_v53, %v4255_v31  ;;  %v2230_v60 = vadd.f32 %v4243_v44, %v2229_v3  ;;  %v2314_v18 = vmul.f32 %v4268_v19, %v4268_v19 }
 0x3b3   :  { %v2818_v2 = vpop.f32.mrf.mxu1  ;;  %v4282_v11 = vmax.f32 %v2238_v34, 0.0 }
 0x3b4   :  { %v2292_v35 = vadd.f32 %v2291_v6, %v4268_v19  ;;  %v2328_v61 = vadd.f32 %v2327_v7, %v2313_v42  ;;  %v4280_v23 = vmax.f32 %v2230_v60, 0.0  ;;  %v2251_v13 = vadd.f32 %v2818_v2, %v4243_v44 }
 0x3b5   :  { %v2242_v49 = vpop.f32.mrf.mxu1  ;;  %v2317_v52 = vmul.f32 %v4282_v11, %v4282_v11 }
 0x3b6   :  { %v2329_v24 = vadd.f32 %v2328_v61, %v2314_v18  ;;  %v2293_v10 = vadd.f32 %v2292_v35, %v4280_v23  ;;  %v2315_v32 = vmul.f32 %v4280_v23, %v4280_v23  ;;  %v2243_v26 = vadd.f32 %v4243_v44, %v2242_v49 }
 0x3b7   :  { %v2819_v54 = vpop.f32.mrf.mxu1  ;;  %v4299_v25 = vmax.f32 %v2251_v13, 0.0 }
 0x3b8   :  { %v2294_v29 = vadd.f32 %v2293_v10, %v4275_v0  ;;  %v2330_v16 = vadd.f32 %v2329_v24, %v2315_v32  ;;  %v4292_v1 = vmax.f32 %v2243_v26, 0.0  ;;  %v2254_v39 = vadd.f32 %v2819_v54, %v4243_v44 }
 0x3b9   :  { %v2245_v5 = vpop.f32.mrf.mxu1  ;;  %v2320_v28 = vmul.f32 %v4299_v25, %v4299_v25 }
 0x3ba   :  { %v2331_v14 = vadd.f32 %v2330_v16, %v2316_v45  ;;  %v2295_v38 = vadd.f32 %v2294_v29, %v4282_v11  ;;  %v2246_v21 = vadd.f32 %v4243_v44, %v2245_v5  ;;  %v2318_v63 = vmul.f32 %v4292_v1, %v4292_v1 }
 0x3bb   :  { %v2822_v56 = vpop.f32.mrf.mxu1  ;;  %v4306_v36 = vmax.f32 %v2254_v39, 0.0 }
 0x3bc   :  { %v2296_v41 = vadd.f32 %v2295_v38, %v4292_v1  ;;  %v2332_v12 = vadd.f32 %v2331_v14, %v2317_v52  ;;  %v4304_v33 = vmax.f32 %v2246_v21, 0.0  ;;  %v2267_v22 = vadd.f32 %v2822_v56, %v4243_v44 }
 0x3bd   :  { %v2258_v8 = vpop.f32.mrf.mxu1  ;;  %v2321_v15 = vmul.f32 %v4306_v36, %v4306_v36 }
 0x3be   :  { %v2333_v27 = vadd.f32 %v2332_v12, %v2318_v63  ;;  %v2297_v51 = vadd.f32 %v2296_v41, %v4304_v33  ;;  %v2319_v55 = vmul.f32 %v4304_v33, %v4304_v33  ;;  %v2259_v37 = vadd.f32 %v4243_v44, %v2258_v8  ;;  %v2351_v12 = vld [vmem:[%s4406_s11] sm:$0x1] }
 0x3bf   :  { %v2823_v17 = vpop.f32.mrf.mxu1  ;;  %v2287_v42 = vmax.f32 %v2267_v22, 0.0 }
 0x3c0   :  { %v2298_v30 = vadd.f32 %v2297_v51, %v4299_v25  ;;  %v2334_v46 = vadd.f32 %v2333_v27, %v2319_v55  ;;  %v4315_v4 = vmax.f32 %v2259_v37, 0.0  ;;  %v2270_v59 = vadd.f32 %v2823_v17, %v4243_v44  ;;  %v2355_v51 = vld [vmem:[%s4407_s12] sm:$0x1] }
 0x3c1   :  { %v2261_v20 = vpop.f32.mrf.mxu1  ;;  %v2324_v2 = vmul.f32 %v2287_v42, %v2287_v42 }
 0x3c2   :  { %v2335_v43 = vadd.f32 %v2334_v46, %v2320_v28  ;;  %v2299_v40 = vadd.f32 %v2298_v30, %v4306_v36  ;;  %v2262_v58 = vadd.f32 %v4243_v44, %v2261_v20  ;;  %v2322_v53 = vmul.f32 %v4315_v4, %v4315_v4 }
 0x3c3   :  { %v2288_v6 = vmax.f32 %v2270_v59, 0.0 }
 0x3c4   :  { %v2300_v57 = vadd.f32 %v2299_v40, %v4315_v4  ;;  %v2336_v50 = vadd.f32 %v2335_v43, %v2321_v15  ;;  %v2286_v3 = vmax.f32 %v2262_v58, 0.0 }
 0x3c5   :  { %v2325_v61 = vmul.f32 %v2288_v6, %v2288_v6 }
 0x3c6   :  { %v2337_v7 = vadd.f32 %v2336_v50, %v2322_v53  ;;  %v2301_v34 = vadd.f32 %v2300_v57, %v2286_v3  ;;  %v2323_v60 = vmul.f32 %v2286_v3, %v2286_v3 }
 0x3c8   :  { %v2302_v35 = vadd.f32 %v2301_v34, %v2287_v42  ;;  %v2338_v18 = vadd.f32 %v2337_v7, %v2323_v60 }
 0x3ca   :  { %v2303_v49 = vadd.f32 %v2302_v35, %v2288_v6  ;;  %v2339_v24 = vadd.f32 %v2338_v18, %v2324_v2 }
 0x3cc   :  { %v2304_v10 = vrot.slane %v2303_v49, 4  ;;  %v2340_v44 = vadd.f32 %v2339_v24, %v2325_v61 }
 0x3ce   :  { %v2305_v32 = vadd.f32 %v2304_v10, %v2303_v49  ;;  %v2341_v13 = vrot.slane %v2340_v44, 4 }
 0x3d0   :  { %v2306_v26 = vrot.slane %v2305_v32, 2  ;;  %v2342_v54 = vadd.f32 %v2341_v13, %v2340_v44 }
 0x3d2   :  { %v2307_v45 = vadd.f32 %v2306_v26, %v2305_v32  ;;  %v2343_v29 = vrot.slane %v2342_v54, 2 }
 0x3d4   :  { %v2308_v16 = vrot.slane %v2307_v45, 1  ;;  %v2344_v39 = vadd.f32 %v2343_v29, %v2342_v54 }
 0x3d6   :  { %v2309_v5 = vadd.f32 %v2308_v16, %v2307_v45  ;;  %v2345_v52 = vrot.slane %v2344_v39, 1 }
 0x3d8   :  { %v2346_v14 = vadd.f32 %v2345_v52, %v2344_v39  ;;  %v2347_v38 = vmul.f32 0.0078125, %v2309_v5 }
 0x3da   :  { %v2348_v21 = vmul.f32 0.0078125, %v2346_v14  ;;  %v2349_v56 = vmul.f32 %v2347_v38, %v2347_v38 }
 0x3dc   :  { %v2350_v41 = vsub.f32 %v2348_v21, %v2349_v56 }
 0x3de   :  { %v2352_v63 = vadd.f32 1e-05, %v2350_v41 }
 0x3e0   :  { %2994 = vrsqrt.f32 %v2352_v63 }
 0x3ed   :  { %v2995_v8 = vpop.eup %2994 }
 0x3ee   :  { %v2354_v27 = vmul.f32 %v2995_v8, %v2351_v12 }
 0x3f0   :  { %v2356_v55 = vmul.f32 %v2354_v27, %v2347_v38  ;;  %v2362_v37 = vrot.slane %v2354_v27, %v3415_v48 }
 0x3f2   :  { %v2357_v17 = vsub.f32 %v2355_v51, %v2356_v55  ;;  %v2364_v28 = vmul.f32 %v2362_v37, %v4248_v9  ;;  %v2365_v30 = vmul.f32 %v2362_v37, %v4253_v47  ;;  %v2366_v46 = vmul.f32 %v2362_v37, %v4251_v62 }
 0x3f3   :  { %v2367_v22 = vmul.f32 %v2362_v37, %v4255_v31  ;;  %v2368_v20 = vmul.f32 %v2362_v37, %v4268_v19  ;;  %v2369_v15 = vmul.f32 %v2362_v37, %v4280_v23  ;;  %v2370_v43 = vmul.f32 %v2362_v37, %v4275_v0 }
 0x3f4   :  { %v2371_v40 = vmul.f32 %v2362_v37, %v4282_v11  ;;  %v2372_v59 = vmul.f32 %v2362_v37, %v4292_v1  ;;  %v2373_v58 = vmul.f32 %v2362_v37, %v4304_v33  ;;  %v2374_v9 = vmul.f32 %v2362_v37, %v4299_v25 }
 0x3f5   :  { %v2375_v47 = vmul.f32 %v2362_v37, %v4306_v36  ;;  %v2384_v62 = vrot.slane %v2357_v17, %v3415_v48  ;;  %v2376_v31 = vmul.f32 %v2362_v37, %v4315_v4  ;;  %v2377_v57 = vmul.f32 %v2362_v37, %v2286_v3 }
 0x3f6   :  { %v2378_v19 = vmul.f32 %v2362_v37, %v2287_v42  ;;  %v2379_v53 = vmul.f32 %v2362_v37, %v2288_v6 }
 0x3f7   :  { %v2386_v23 = vadd.f32 %v2384_v62, %v2364_v28  ;;  %v2387_v50 = vadd.f32 %v2384_v62, %v2365_v30  ;;  %v2388_v0 = vadd.f32 %v2384_v62, %v2366_v46  ;;  %v2389_v7 = vadd.f32 %v2384_v62, %v2367_v22 }
 0x3f8   :  { %v2390_v11 = vadd.f32 %v2384_v62, %v2368_v20  ;;  %v2391_v34 = vadd.f32 %v2384_v62, %v2369_v15  ;;  %v2392_v1 = vadd.f32 %v2384_v62, %v2370_v43  ;;  %v2393_v60 = vadd.f32 %v2384_v62, %v2371_v40 }
 0x3f9   :  { %v2394_v33 = vadd.f32 %v2384_v62, %v2372_v59  ;;  %v2395_v2 = vadd.f32 %v2384_v62, %v2373_v58  ;;  %v2396_v25 = vadd.f32 %v2384_v62, %v2374_v9  ;;  %v2397_v35 = vadd.f32 %v2384_v62, %v2375_v47  ;;  %2402 = vst [vmem:[%s4408_s13] sm:$0xff] %v2386_v23 }
 0x3fa   :  { %2403 = vst [vmem:[%s4408_s13 + $0x8] sm:$0xff] %v2387_v50  ;;  %2404 = vst [vmem:[%s4408_s13 + $0x10] sm:$0xff] %v2388_v0  ;;  %v2398_v48 = vadd.f32 %v2384_v62, %v2376_v31  ;;  %v2399_v36 = vadd.f32 %v2384_v62, %v2377_v57  ;;  %v2400_v4 = vadd.f32 %v2384_v62, %v2378_v19 }
 0x3fb   :  { %2405 = vst [vmem:[%s4408_s13 + $0x18] sm:$0xff] %v2389_v7  ;;  %v2401_v42 = vadd.f32 %v2384_v62, %v2379_v53  ;;  %2406 = vst [vmem:[%s4408_s13 + $0x20] sm:$0xff] %v2390_v11 }
 0x3fc   :  { %2407 = vst [vmem:[%s4408_s13 + $0x28] sm:$0xff] %v2391_v34  ;;  %2408 = vst [vmem:[%s4408_s13 + $0x30] sm:$0xff] %v2392_v1 }
 0x3fd   :  { %2409 = vst [vmem:[%s4408_s13 + $0x38] sm:$0xff] %v2393_v60  ;;  %2410 = vst [vmem:[%s4408_s13 + $0x40] sm:$0xff] %v2394_v33 }
 0x3fe   :  { %2411 = vst [vmem:[%s4408_s13 + $0x48] sm:$0xff] %v2395_v2  ;;  %2412 = vst [vmem:[%s4408_s13 + $0x50] sm:$0xff] %v2396_v25 }
 0x3ff   :  { %2413 = vst [vmem:[%s4408_s13 + $0x58] sm:$0xff] %v2397_v35  ;;  %2414 = vst [vmem:[%s4408_s13 + $0x60] sm:$0xff] %v2398_v48 }
 0x400   :  { %2415 = vst [vmem:[%s4408_s13 + $0x68] sm:$0xff] %v2399_v36  ;;  %2416 = vst [vmem:[%s4408_s13 + $0x70] sm:$0xff] %v2400_v4 }
 0x401   :  { %2417 = vst [vmem:[%s4408_s13 + $0x78] sm:$0xff] %v2401_v42 }

</bundles_post_ra>
